<compile_context>
chip_gen: v7x
topology: tpu7x:2x2x1
jax: 0.10.0
libtpu: 0.0.40
codegen_flags: <defaults>
</compile_context>

<pallas_src>
import jax
import jax.numpy as jnp
from jax.experimental import pallas as pl
from jax.experimental.pallas import tpu as pltpu


def _round_up(x, m):
    return (x + m - 1) // m * m


# ---------------------------------------------------------------------------
# Kernel 1: fused 3x3 conv (im2col matmul) + bias + 2x2 max-pool + ReLU.
# ---------------------------------------------------------------------------
def conv_pool_relu_kernel(p_ref, w_ref, b_ref, o_ref):
    # p_ref: (4, TM, Kp)  4 = positions of the 2x2 pool window,
    #                     TM rows of flattened (batch * pooled-spatial),
    #                     Kp = 9*Cin zero-padded to a multiple of 128.
    # w_ref: (Kp, Cout)   VMEM-resident (constant index_map).
    # b_ref: (1, Cout)
    # o_ref: (TM, Cout)
    w = w_ref[...]
    acc = jnp.dot(p_ref[0], w, preferred_element_type=jnp.float32)
    for i in range(1, 4):                     # static unroll over pool window
        acc = jnp.maximum(
            acc, jnp.dot(p_ref[i], w, preferred_element_type=jnp.float32))
    # maxpool(relu(z + b)) == relu(max(z) + b): bias added once, ReLU once.
    o_ref[...] = jnp.maximum(acc + b_ref[...], 0.0).astype(o_ref.dtype)


# ---------------------------------------------------------------------------
# Kernel 2: fused 3x3 conv + bias + ReLU + global-avg-pool + Linear head.
# wc_ref is pre-scaled by 1/S so a plain row-sum implements the average pool.
# ---------------------------------------------------------------------------
def head_kernel(p_ref, w3_ref, b3_ref, wc_ref, bc_ref, o_ref):
    n = o_ref.shape[0]
    y = jnp.maximum(
        jnp.dot(p_ref[...], w3_ref[...], preferred_element_type=jnp.float32)
        + b3_ref[...], 0.0)                                    # (N*S, C3)
    pooled = y.reshape(n, -1, y.shape[-1]).sum(axis=1)         # (N, C3)
    o_ref[...] = (jnp.dot(pooled, wc_ref[...],
                          preferred_element_type=jnp.float32)
                  + bc_ref[...]).astype(o_ref.dtype)


# ---------------------------------------------------------------------------
# Wrapper glue (pure JAX): im2col packing, constant folding, pallas_call.
# ---------------------------------------------------------------------------
def _im2col3x3(x_nhwc):
    """3x3 / padding=1 im2col: (N,H,W,C) -> (N,H,W,9C), k = dy*3C + dx*C + c."""
    N, H, W, C = x_nhwc.shape
    xp = jnp.pad(x_nhwc, ((0, 0), (1, 1), (1, 1), (0, 0)))
    return jnp.concatenate(
        [xp[:, dy:dy + H, dx:dx + W, :] for dy in range(3) for dx in range(3)],
        axis=-1)


def _conv_weight_mat(w, k_pad):
    """(Cout, Cin, 3, 3) -> (Kp, Cout) matching the im2col k ordering."""
    cout, cin = w.shape[0], w.shape[1]
    w_mat = jnp.transpose(w, (2, 3, 1, 0)).reshape(9 * cin, cout)
    return jnp.pad(w_mat, ((0, k_pad - 9 * cin), (0, 0)))


def conv3x3_relu_maxpool(x_nhwc, w, b, *, tile_m=512):
    """Conv2d(3x3, pad=1) + ReLU + MaxPool2d(2) fused in one Pallas kernel."""
    N, H, W, Cin = x_nhwc.shape
    Cout = w.shape[0]
    Ho, Wo = H // 2, W // 2
    M = N * Ho * Wo
    K = 9 * Cin
    Kp = _round_up(K, 128)            # lane-dense contraction dim (zero pad)

    # im2col, then pack the 4 patch rows of each 2x2 pool window on axis 0.
    patches = _im2col3x3(x_nhwc)                        # (N, H, W, K)
    patches = patches.reshape(N, Ho, 2, Wo, 2, K)
    patches = jnp.transpose(patches, (2, 4, 0, 1, 3, 5)).reshape(4, M, K)
    patches = jnp.pad(patches, ((0, 0), (0, 0), (0, Kp - K)))

    w_mat = _conv_weight_mat(w, Kp)                     # (Kp, Cout)
    b_row = b.reshape(1, Cout)

    TM = min(tile_m, _round_up(M, 8))                   # M tile, multiple of 8
    Mp = _round_up(M, TM)
    if Mp != M:
        patches = jnp.pad(patches, ((0, 0), (0, Mp - M), (0, 0)))

    out = pl.pallas_call(
        conv_pool_relu_kernel,
        out_shape=jax.ShapeDtypeStruct((Mp, Cout), x_nhwc.dtype),
        grid=(Mp // TM,),
        in_specs=[
            pl.BlockSpec((4, TM, Kp), lambda m: (0, m, 0)),    # per-M-tile slab
            pl.BlockSpec((Kp, Cout), lambda m: (0, 0)),        # weight, resident
            pl.BlockSpec((1, Cout), lambda m: (0, 0)),         # bias, resident
        ],
        out_specs=pl.BlockSpec((TM, Cout), lambda m: (m, 0)),
        compiler_params=pltpu.CompilerParams(
            dimension_semantics=("parallel",)),
    )(patches, w_mat, b_row)

    return out[:M].reshape(N, Ho, Wo, Cout)


def conv3x3_relu_gap_linear(x_nhwc, w3, b3, wc, bc):
    """Conv2d(3x3,pad=1) + ReLU + AdaptiveAvgPool2d(1) + Linear, one kernel."""
    N, H, W, Cin = x_nhwc.shape
    C3 = w3.shape[0]
    num_classes = wc.shape[0]
    S = H * W
    K = 9 * Cin
    Kp = _round_up(K, 128)

    patches = _im2col3x3(x_nhwc).reshape(N * S, K)
    patches = jnp.pad(patches, ((0, 0), (0, Kp - K)))

    w3_mat = _conv_weight_mat(w3, Kp)                   # (Kp, C3)
    b3_row = b3.reshape(1, C3)
    wc_mat = wc.T * (1.0 / S)     # fold the 1/S average-pool factor into W_c
    bc_row = bc.reshape(1, num_classes)

    # Tiny head: whole-array blocks, single invocation.
    return pl.pallas_call(
        head_kernel,
        out_shape=jax.ShapeDtypeStruct((N, num_classes), x_nhwc.dtype),
    )(patches, w3_mat, b3_row, wc_mat, bc_row)


def cnn_forward(x_nchw, params):
    (w1, b1, w2, b2, w3, b3, wc, bc) = params
    x = jnp.transpose(x_nchw, (0, 2, 3, 1))             # NCHW -> NHWC once
    x = conv3x3_relu_maxpool(x, w1, b1)                 # (N, H/2, W/2, 16)
    x = conv3x3_relu_maxpool(x, w2, b2)                 # (N, H/4, W/4, 32)
    return conv3x3_relu_gap_linear(x, w3, b3, wc, bc)   # (N, num_classes)


# ---------------------------------------------------------------------------
# Pure-JAX reference mirroring the PyTorch forward.
# ---------------------------------------------------------------------------
def reference_cnn(x_nchw, params):
    (w1, b1, w2, b2, w3, b3, wc, bc) = params

    def conv(x, w, b):
        y = jax.lax.conv_general_dilated(
            x, w, window_strides=(1, 1), padding=((1, 1), (1, 1)),
            dimension_numbers=('NCHW', 'OIHW', 'NCHW'))
        return y + b[None, :, None, None]

    def maxpool2(x):
        n, c, h, w = x.shape
        return x.reshape(n, c, h // 2, 2, w // 2, 2).max(axis=(3, 5))

    y = maxpool2(jnp.maximum(conv(x_nchw, w1, b1), 0.0))
    y = maxpool2(jnp.maximum(conv(y, w2, b2), 0.0))
    y = jnp.maximum(conv(y, w3, b3), 0.0)
    pooled = y.mean(axis=(2, 3))                        # AdaptiveAvgPool2d(1)
    return pooled @ wc.T + bc


if __name__ == "__main__":
    num_classes, in_channels = 2, 1
    N, H, W = 2, 16, 16

    key = jax.random.PRNGKey(0)
    k = jax.random.split(key, 9)

    def conv_w(kk, cout, cin):
        return (jax.random.normal(kk, (cout, cin, 3, 3), jnp.float32)
                / (9 * cin) ** 0.5)

    x = jax.random.normal(k[0], (N, in_channels, H, W), jnp.float32)
    w1 = conv_w(k[1], 16, in_channels)
    b1 = 0.1 * jax.random.normal(k[2], (16,), jnp.float32)
    w2 = conv_w(k[3], 32, 16)
    b2 = 0.1 * jax.random.normal(k[4], (32,), jnp.float32)
    w3 = conv_w(k[5], 64, 32)
    b3 = 0.1 * jax.random.normal(k[6], (64,), jnp.float32)
    wc = jax.random.normal(k[7], (num_classes, 64), jnp.float32) / 8.0
    bc = 0.1 * jax.random.normal(k[8], (num_classes,), jnp.float32)

    params = (w1, b1, w2, b2, w3, b3, wc, bc)

    out = jax.jit(cnn_forward)(x, params)
    out = jax.block_until_ready(out)

    ref = reference_cnn(x, params)
    assert out.shape == (N, num_classes), out.shape
    err = float(jnp.max(jnp.abs(out - ref)))
    assert jnp.allclose(out, ref, atol=1e-4, rtol=1e-4), err

    print("KERNEL_OK")
</pallas_src>

<mosaic_0001>
module attributes {stable_mosaic.version = 11 : i64} {
  func.func @conv_pool_relu_kernel(%arg0: i32, %arg1: memref<4x128x128xf32, #tpu.memory_space<vmem>>, %arg2: memref<128x16xf32, #tpu.memory_space<vmem>>, %arg3: memref<1x16xf32, #tpu.memory_space<vmem>>, %arg4: memref<128x16xf32, #tpu.memory_space<vmem>>) attributes {dimension_semantics = [#tpu.dimension_semantics<parallel>], iteration_bounds = array<i64: 1>, scalar_prefetch = 0 : i64, scratch_operands = 0 : i64, tpu.core_type = #tpu.core_type<tc>, window_params = [{transform_indices = @transform_0, window_bounds = array<i64: 4, 128, 128>}, {pipeline_mode = #tpu.pipeline_mode<synchronous>, transform_indices = @transform_1, window_bounds = array<i64: 128, 16>}, {pipeline_mode = #tpu.pipeline_mode<synchronous>, transform_indices = @transform_2, window_bounds = array<i64: 1, 16>}, {transform_indices = @transform_3, window_bounds = array<i64: 128, 16>}]} {
    %c0 = arith.constant 0 : index
    %c0_0 = arith.constant 0 : index
    %0 = vector.load %arg2[%c0, %c0_0] : memref<128x16xf32, #tpu.memory_space<vmem>>, vector<128x16xf32>
    %c0_1 = arith.constant 0 : index
    %c0_2 = arith.constant 0 : index
    %c0_3 = arith.constant 0 : index
    %1 = vector.load %arg1[%c0_1, %c0_2, %c0_3] : memref<4x128x128xf32, #tpu.memory_space<vmem>>, vector<1x128x128xf32>
    %2 = vector.shape_cast %1 : vector<1x128x128xf32> to vector<128x128xf32>
    %cst = arith.constant dense<0.000000e+00> : vector<128x16xf32>
    %3 = tpu.matmul %2, %0, %cst {dimension_numbers = #tpu.dot_dimension_numbers<[1], [0], [0], [1], [0, 0, 1, 1], [], []>} : vector<128x128xf32>, vector<128x16xf32>, vector<128x16xf32> -> vector<128x16xf32>
    %c1 = arith.constant 1 : index
    %c0_4 = arith.constant 0 : index
    %c0_5 = arith.constant 0 : index
    %4 = vector.load %arg1[%c1, %c0_4, %c0_5] : memref<4x128x128xf32, #tpu.memory_space<vmem>>, vector<1x128x128xf32>
    %5 = vector.shape_cast %4 : vector<1x128x128xf32> to vector<128x128xf32>
    %cst_6 = arith.constant dense<0.000000e+00> : vector<128x16xf32>
    %6 = tpu.matmul %5, %0, %cst_6 {dimension_numbers = #tpu.dot_dimension_numbers<[1], [0], [0], [1], [0, 0, 1, 1], [], []>} : vector<128x128xf32>, vector<128x16xf32>, vector<128x16xf32> -> vector<128x16xf32>
    %7 = arith.maximumf %3, %6 : vector<128x16xf32>
    %c2 = arith.constant 2 : index
    %c0_7 = arith.constant 0 : index
    %c0_8 = arith.constant 0 : index
    %8 = vector.load %arg1[%c2, %c0_7, %c0_8] : memref<4x128x128xf32, #tpu.memory_space<vmem>>, vector<1x128x128xf32>
    %9 = vector.shape_cast %8 : vector<1x128x128xf32> to vector<128x128xf32>
    %cst_9 = arith.constant dense<0.000000e+00> : vector<128x16xf32>
    %10 = tpu.matmul %9, %0, %cst_9 {dimension_numbers = #tpu.dot_dimension_numbers<[1], [0], [0], [1], [0, 0, 1, 1], [], []>} : vector<128x128xf32>, vector<128x16xf32>, vector<128x16xf32> -> vector<128x16xf32>
    %11 = arith.maximumf %7, %10 : vector<128x16xf32>
    %c3 = arith.constant 3 : index
    %c0_10 = arith.constant 0 : index
    %c0_11 = arith.constant 0 : index
    %12 = vector.load %arg1[%c3, %c0_10, %c0_11] : memref<4x128x128xf32, #tpu.memory_space<vmem>>, vector<1x128x128xf32>
    %13 = vector.shape_cast %12 : vector<1x128x128xf32> to vector<128x128xf32>
    %cst_12 = arith.constant dense<0.000000e+00> : vector<128x16xf32>
    %14 = tpu.matmul %13, %0, %cst_12 {dimension_numbers = #tpu.dot_dimension_numbers<[1], [0], [0], [1], [0, 0, 1, 1], [], []>} : vector<128x128xf32>, vector<128x16xf32>, vector<128x16xf32> -> vector<128x16xf32>
    %15 = arith.maximumf %11, %14 : vector<128x16xf32>
    %c0_13 = arith.constant 0 : index
    %c0_14 = arith.constant 0 : index
    %16 = vector.load %arg3[%c0_13, %c0_14] : memref<1x16xf32, #tpu.memory_space<vmem>>, vector<1x16xf32>
    %17 = vector.broadcast %16 : vector<1x16xf32> to vector<128x16xf32>
    %18 = arith.addf %15, %17 : vector<128x16xf32>
    %cst_15 = arith.constant 0.000000e+00 : f32
    %19 = vector.broadcast %cst_15 : f32 to vector<128x16xf32>
    %20 = arith.maximumf %18, %19 : vector<128x16xf32>
    %c0_16 = arith.constant 0 : index
    %c0_17 = arith.constant 0 : index
    %21 = vector.load %arg4[%c0_16, %c0_17] : memref<128x16xf32, #tpu.memory_space<vmem>>, vector<128x16xf32>
    tpu.vector_store %arg4[%c0_16, %c0_17], %20 {strides = array<i32>} : memref<128x16xf32, #tpu.memory_space<vmem>>, vector<128x16xf32>,
    return
  }
  func.func @transform_0(%arg0: i32) -> (i32, i32, i32) {
    %c0_i32 = arith.constant 0 : i32
    %c0_i32_0 = arith.constant 0 : i32
    %c0_i32_1 = arith.constant 0 : i32
    return %c0_i32, %arg0, %c0_i32_0 : i32, i32, i32
  }
  func.func @transform_1(%arg0: i32) -> (i32, i32) {
    %c0_i32 = arith.constant 0 : i32
    %c0_i32_0 = arith.constant 0 : i32
    %c0_i32_1 = arith.constant 0 : i32
    return %c0_i32, %c0_i32_0 : i32, i32
  }
  func.func @transform_2(%arg0: i32) -> (i32, i32) {
    %c0_i32 = arith.constant 0 : i32
    %c0_i32_0 = arith.constant 0 : i32
    %c0_i32_1 = arith.constant 0 : i32
    return %c0_i32, %c0_i32_0 : i32, i32
  }
  func.func @transform_3(%arg0: i32) -> (i32, i32) {
    %c0_i32 = arith.constant 0 : i32
    %c0_i32_0 = arith.constant 0 : i32
    return %arg0, %c0_i32 : i32, i32
  }
}

module attributes {stable_mosaic.version = 11 : i64} {
  func.func @conv_pool_relu_kernel(%arg0: i32, %arg1: memref<4x32x256xf32, #tpu.memory_space<vmem>>, %arg2: memref<256x32xf32, #tpu.memory_space<vmem>>, %arg3: memref<1x32xf32, #tpu.memory_space<vmem>>, %arg4: memref<32x32xf32, #tpu.memory_space<vmem>>) attributes {dimension_semantics = [#tpu.dimension_semantics<parallel>], iteration_bounds = array<i64: 1>, scalar_prefetch = 0 : i64, scratch_operands = 0 : i64, tpu.core_type = #tpu.core_type<tc>, window_params = [{transform_indices = @transform_0, window_bounds = array<i64: 4, 32, 256>}, {pipeline_mode = #tpu.pipeline_mode<synchronous>, transform_indices = @transform_1, window_bounds = array<i64: 256, 32>}, {pipeline_mode = #tpu.pipeline_mode<synchronous>, transform_indices = @transform_2, window_bounds = array<i64: 1, 32>}, {transform_indices = @transform_3, window_bounds = array<i64: 32, 32>}]} {
    %c0 = arith.constant 0 : index
    %c0_0 = arith.constant 0 : index
    %0 = vector.load %arg2[%c0, %c0_0] : memref<256x32xf32, #tpu.memory_space<vmem>>, vector<256x32xf32>
    %c0_1 = arith.constant 0 : index
    %c0_2 = arith.constant 0 : index
    %c0_3 = arith.constant 0 : index
    %1 = vector.load %arg1[%c0_1, %c0_2, %c0_3] : memref<4x32x256xf32, #tpu.memory_space<vmem>>, vector<1x32x256xf32>
    %2 = vector.shape_cast %1 : vector<1x32x256xf32> to vector<32x256xf32>
    %cst = arith.constant dense<0.000000e+00> : vector<32x32xf32>
    %3 = tpu.matmul %2, %0, %cst {dimension_numbers = #tpu.dot_dimension_numbers<[1], [0], [0], [1], [0, 0, 1, 1], [], []>} : vector<32x256xf32>, vector<256x32xf32>, vector<32x32xf32> -> vector<32x32xf32>
    %c1 = arith.constant 1 : index
    %c0_4 = arith.constant 0 : index
    %c0_5 = arith.constant 0 : index
    %4 = vector.load %arg1[%c1, %c0_4, %c0_5] : memref<4x32x256xf32, #tpu.memory_space<vmem>>, vector<1x32x256xf32>
    %5 = vector.shape_cast %4 : vector<1x32x256xf32> to vector<32x256xf32>
    %cst_6 = arith.constant dense<0.000000e+00> : vector<32x32xf32>
    %6 = tpu.matmul %5, %0, %cst_6 {dimension_numbers = #tpu.dot_dimension_numbers<[1], [0], [0], [1], [0, 0, 1, 1], [], []>} : vector<32x256xf32>, vector<256x32xf32>, vector<32x32xf32> -> vector<32x32xf32>
    %7 = arith.maximumf %3, %6 : vector<32x32xf32>
    %c2 = arith.constant 2 : index
    %c0_7 = arith.constant 0 : index
    %c0_8 = arith.constant 0 : index
    %8 = vector.load %arg1[%c2, %c0_7, %c0_8] : memref<4x32x256xf32, #tpu.memory_space<vmem>>, vector<1x32x256xf32>
    %9 = vector.shape_cast %8 : vector<1x32x256xf32> to vector<32x256xf32>
    %cst_9 = arith.constant dense<0.000000e+00> : vector<32x32xf32>
    %10 = tpu.matmul %9, %0, %cst_9 {dimension_numbers = #tpu.dot_dimension_numbers<[1], [0], [0], [1], [0, 0, 1, 1], [], []>} : vector<32x256xf32>, vector<256x32xf32>, vector<32x32xf32> -> vector<32x32xf32>
    %11 = arith.maximumf %7, %10 : vector<32x32xf32>
    %c3 = arith.constant 3 : index
    %c0_10 = arith.constant 0 : index
    %c0_11 = arith.constant 0 : index
    %12 = vector.load %arg1[%c3, %c0_10, %c0_11] : memref<4x32x256xf32, #tpu.memory_space<vmem>>, vector<1x32x256xf32>
    %13 = vector.shape_cast %12 : vector<1x32x256xf32> to vector<32x256xf32>
    %cst_12 = arith.constant dense<0.000000e+00> : vector<32x32xf32>
    %14 = tpu.matmul %13, %0, %cst_12 {dimension_numbers = #tpu.dot_dimension_numbers<[1], [0], [0], [1], [0, 0, 1, 1], [], []>} : vector<32x256xf32>, vector<256x32xf32>, vector<32x32xf32> -> vector<32x32xf32>
    %15 = arith.maximumf %11, %14 : vector<32x32xf32>
    %c0_13 = arith.constant 0 : index
    %c0_14 = arith.constant 0 : index
    %16 = vector.load %arg3[%c0_13, %c0_14] : memref<1x32xf32, #tpu.memory_space<vmem>>, vector<1x32xf32>
    %17 = vector.broadcast %16 : vector<1x32xf32> to vector<32x32xf32>
    %18 = arith.addf %15, %17 : vector<32x32xf32>
    %cst_15 = arith.constant 0.000000e+00 : f32
    %19 = vector.broadcast %cst_15 : f32 to vector<32x32xf32>
    %20 = arith.maximumf %18, %19 : vector<32x32xf32>
    %c0_16 = arith.constant 0 : index
    %c0_17 = arith.constant 0 : index
    %21 = vector.load %arg4[%c0_16, %c0_17] : memref<32x32xf32, #tpu.memory_space<vmem>>, vector<32x32xf32>
    tpu.vector_store %arg4[%c0_16, %c0_17], %20 {strides = array<i32>} : memref<32x32xf32, #tpu.memory_space<vmem>>, vector<32x32xf32>,
    return
  }
  func.func @transform_0(%arg0: i32) -> (i32, i32, i32) {
    %c0_i32 = arith.constant 0 : i32
    %c0_i32_0 = arith.constant 0 : i32
    %c0_i32_1 = arith.constant 0 : i32
    return %c0_i32, %arg0, %c0_i32_0 : i32, i32, i32
  }
  func.func @transform_1(%arg0: i32) -> (i32, i32) {
    %c0_i32 = arith.constant 0 : i32
    %c0_i32_0 = arith.constant 0 : i32
    %c0_i32_1 = arith.constant 0 : i32
    return %c0_i32, %c0_i32_0 : i32, i32
  }
  func.func @transform_2(%arg0: i32) -> (i32, i32) {
    %c0_i32 = arith.constant 0 : i32
    %c0_i32_0 = arith.constant 0 : i32
    %c0_i32_1 = arith.constant 0 : i32
    return %c0_i32, %c0_i32_0 : i32, i32
  }
  func.func @transform_3(%arg0: i32) -> (i32, i32) {
    %c0_i32 = arith.constant 0 : i32
    %c0_i32_0 = arith.constant 0 : i32
    return %arg0, %c0_i32 : i32, i32
  }
}

module attributes {stable_mosaic.version = 11 : i64} {
  func.func @head_kernel(%arg0: memref<32x384xf32, #tpu.memory_space<vmem>>, %arg1: memref<384x64xf32, #tpu.memory_space<vmem>>, %arg2: memref<1x64xf32, #tpu.memory_space<vmem>>, %arg3: memref<64x2xf32, #tpu.memory_space<vmem>>, %arg4: memref<1x2xf32, #tpu.memory_space<vmem>>, %arg5: memref<2x2xf32, #tpu.memory_space<vmem>>) attributes {dimension_semantics = [], scalar_prefetch = 0 : i64, scratch_operands = 0 : i64, tpu.core_type = #tpu.core_type<tc>} {
    %c0 = arith.constant 0 : index
    %c0_0 = arith.constant 0 : index
    %0 = vector.load %arg0[%c0, %c0_0] : memref<32x384xf32, #tpu.memory_space<vmem>>, vector<32x384xf32>
    %c0_1 = arith.constant 0 : index
    %c0_2 = arith.constant 0 : index
    %1 = vector.load %arg1[%c0_1, %c0_2] : memref<384x64xf32, #tpu.memory_space<vmem>>, vector<384x64xf32>
    %cst = arith.constant dense<0.000000e+00> : vector<32x64xf32>
    %2 = tpu.matmul %0, %1, %cst {dimension_numbers = #tpu.dot_dimension_numbers<[1], [0], [0], [1], [0, 0, 1, 1], [], []>} : vector<32x384xf32>, vector<384x64xf32>, vector<32x64xf32> -> vector<32x64xf32>
    %c0_3 = arith.constant 0 : index
    %c0_4 = arith.constant 0 : index
    %3 = vector.load %arg2[%c0_3, %c0_4] : memref<1x64xf32, #tpu.memory_space<vmem>>, vector<1x64xf32>
    %4 = vector.broadcast %3 : vector<1x64xf32> to vector<32x64xf32>
    %5 = arith.addf %2, %4 : vector<32x64xf32>
    %cst_5 = arith.constant 0.000000e+00 : f32
    %6 = vector.broadcast %cst_5 : f32 to vector<32x64xf32>
    %7 = arith.maximumf %5, %6 : vector<32x64xf32>
    %8 = vector.shape_cast %7 : vector<32x64xf32> to vector<2x16x64xf32>
    %cst_6 = arith.constant dense<0.000000e+00> : vector<2x64xf32>
    %9 = vector.multi_reduction <add>, %8, %cst_6 [1] : vector<2x16x64xf32> to vector<2x64xf32>
    %c0_7 = arith.constant 0 : index
    %c0_8 = arith.constant 0 : index
    %10 = vector.load %arg3[%c0_7, %c0_8] : memref<64x2xf32, #tpu.memory_space<vmem>>, vector<64x2xf32>
    %cst_9 = arith.constant dense<0.000000e+00> : vector<2x2xf32>
    %11 = tpu.matmul %9, %10, %cst_9 {dimension_numbers = #tpu.dot_dimension_numbers<[1], [0], [0], [1], [0, 0, 1, 1], [], []>} : vector<2x64xf32>, vector<64x2xf32>, vector<2x2xf32> -> vector<2x2xf32>
    %c0_10 = arith.constant 0 : index
    %c0_11 = arith.constant 0 : index
    %12 = vector.load %arg4[%c0_10, %c0_11] : memref<1x2xf32, #tpu.memory_space<vmem>>, vector<1x2xf32>
    %13 = vector.broadcast %12 : vector<1x2xf32> to vector<2x2xf32>
    %14 = arith.addf %11, %13 : vector<2x2xf32>
    %c0_12 = arith.constant 0 : index
    %c0_13 = arith.constant 0 : index
    %15 = vector.load %arg5[%c0_12, %c0_13] : memref<2x2xf32, #tpu.memory_space<vmem>>, vector<2x2xf32>
    tpu.vector_store %arg5[%c0_12, %c0_13], %14 {strides = array<i32>} : memref<2x2xf32, #tpu.memory_space<vmem>>, vector<2x2xf32>,
    return
  }
}

</mosaic_0001>

<bundles_post_ra>
// kernel: cnn_forward.3
= control target key start
LH: loop header
LB: loop body
LE: loop exit
PB: predicated region body
PF: predicated region fallthrough
CT: control target
= control target key end

     0   :  { %vm764_vm0 = vcmask 130048   ;;  %s1844_s1 = inlined_call_operand.vmem [shape: f32[128,16], index: 1, kind: input, shape index: {}]   ;;  %s1845_s0 = inlined_call_operand.vmem [shape: f32[4,128,128], index: 0, kind: input, shape index: {}]   ;;  %s1846_s2 = inlined_call_operand.vmem [shape: f32[1,16], index: 2, kind: input, shape index: {}]   ;;  %s1847_s3 = inlined_call_operand.vmem [shape: f32[128,16], index: 3, kind: output, shape index: {}]  }
   0x1   :  { %v14_v0 = vld [vmem:[%s1844_s1] sm:$0xff]  ;;  %v15_v1 = vld [vmem:[%s1844_s1 + $0x8] sm:$0xff]  ;;  %v16_v2 = vld [vmem:[%s1844_s1 + $0x10] sm:$0xff] }
   0x2   :  { %v1343_v3 = vpack.c.bf16 %v15_v1, %v14_v0  ;;  %v17_v4 = vld [vmem:[%s1844_s1 + $0x18] sm:$0xff]  ;;  %v18_v6 = vld [vmem:[%s1844_s1 + $0x20] sm:$0xff]  ;;  %v19_v7 = vld [vmem:[%s1844_s1 + $0x28] sm:$0xff] }
   0x3   :  { %v1348_v5 = vpack.c.bf16 %v17_v4, %v16_v2  ;;  %v1362_v8 = vpack.c.bf16 %v19_v7, %v18_v6  ;;  %v30_v9 = vld [vmem:[%s1845_s0] sm:$0xff]  ;;  %v20_v11 = vld [vmem:[%s1844_s1 + $0x30] sm:$0xff]  ;;  %v21_v12 = vld [vmem:[%s1844_s1 + $0x38] sm:$0xff] }
   0x4   :  { %1187 = vmatprep.subr.bf16.mxu0 %v1343_v3  ;;  %1219 = vmatprep.subr.bf16.mxu1 %v1343_v3  ;;  %v785_v10 = vld [vmem:[%s1845_s0 + $0x80] sm:$0xff]  ;;  %v1380_v13 = vpack.c.bf16 %v21_v12, %v20_v11  ;;  %v23_v15 = vld [vmem:[%s1844_s1 + $0x48] sm:$0xff]  ;;  %v24_v17 = vld [vmem:[%s1844_s1 + $0x50] sm:$0xff] }
   0x5   :  { %1189 = vmatpush3.bf16.msra.mxu0 %v1343_v3  ;;  %1221 = vmatpush3.bf16.msra.mxu1 %v1343_v3  ;;  %v22_v14 = vld [vmem:[%s1844_s1 + $0x40] sm:$0xff]  ;;  %v25_v18 = vld [vmem:[%s1844_s1 + $0x58] sm:$0xff]  ;;  %v27_v21 = vld [vmem:[%s1844_s1 + $0x68] sm:$0xff] }
   0x6   :  { %1191 = vmatprep.subr.bf16.mxu0 %v1348_v5  ;;  %1223 = vmatprep.subr.bf16.mxu1 %v1348_v5  ;;  %v1392_v16 = vpack.c.bf16 %v23_v15, %v22_v14  ;;  %v1404_v19 = vpack.c.bf16 %v25_v18, %v24_v17  ;;  %v26_v20 = vld [vmem:[%s1844_s1 + $0x60] sm:$0xff]  ;;  %v28_v23 = vld [vmem:[%s1844_s1 + $0x70] sm:$0xff]  ;;  %v29_v24 = vld [vmem:[%s1844_s1 + $0x78] sm:$0xff] }
   0x7   :  { %994 = vmatprep.mubr.f32.mxu0 %v30_v9  ;;  %1050 = vmatprep.mubr.f32.mxu1 %v785_v10  ;;  %v1416_v22 = vpack.c.bf16 %v27_v21, %v26_v20  ;;  %v1428_v25 = vpack.c.bf16 %v29_v24, %v28_v23  ;;  %v31_v26 = vld [vmem:[%s1845_s0 + $0x8] sm:$0xff]  ;;  %v32_v28 = vld [vmem:[%s1845_s0 + $0x10] sm:$0xff]  ;;  %v33_v30 = vld [vmem:[%s1845_s0 + $0x18] sm:$0xff] }
   0x8   :  { %v786_v27 = vld [vmem:[%s1845_s0 + $0x88] sm:$0xff]  ;;  %v787_v29 = vld [vmem:[%s1845_s0 + $0x90] sm:$0xff]  ;;  %v788_v31 = vld [vmem:[%s1845_s0 + $0x98] sm:$0xff] }
   0x9   :  { %1193 = vmatpush3.bf16.msra.mxu0 %v1348_v5  ;;  %1225 = vmatpush3.bf16.msra.mxu1 %v1348_v5  ;;  %v34_v32 = vld [vmem:[%s1845_s0 + $0x20] sm:$0xff]  ;;  %v35_v34 = vld [vmem:[%s1845_s0 + $0x28] sm:$0xff]  ;;  %v36_v36 = vld [vmem:[%s1845_s0 + $0x30] sm:$0xff] }
   0xa   :  { %1195 = vmatprep.subr.bf16.mxu0 %v1362_v8  ;;  %1227 = vmatprep.subr.bf16.mxu1 %v1362_v8  ;;  %v789_v33 = vld [vmem:[%s1845_s0 + $0xa0] sm:$0xff]  ;;  %v790_v35 = vld [vmem:[%s1845_s0 + $0xa8] sm:$0xff]  ;;  %v791_v37 = vld [vmem:[%s1845_s0 + $0xb0] sm:$0xff] }
   0xb   :  { %v37_v38 = vld [vmem:[%s1845_s0 + $0x38] sm:$0xff]  ;;  %v38_v40 = vld [vmem:[%s1845_s0 + $0x40] sm:$0xff]  ;;  %v39_v42 = vld [vmem:[%s1845_s0 + $0x48] sm:$0xff] }
   0xc   :  { %v792_v39 = vld [vmem:[%s1845_s0 + $0xb8] sm:$0xff]  ;;  %v793_v41 = vld [vmem:[%s1845_s0 + $0xc0] sm:$0xff]  ;;  %v794_v43 = vld [vmem:[%s1845_s0 + $0xc8] sm:$0xff] }
   0xd   :  { %1197 = vmatpush3.bf16.msra.mxu0 %v1362_v8  ;;  %1229 = vmatpush3.bf16.msra.mxu1 %v1362_v8  ;;  %v40_v44 = vld [vmem:[%s1845_s0 + $0x50] sm:$0xff]  ;;  %v41_v46 = vld [vmem:[%s1845_s0 + $0x58] sm:$0xff]  ;;  %v42_v48 = vld [vmem:[%s1845_s0 + $0x60] sm:$0xff] }
   0xe   :  { %1199 = vmatprep.subr.bf16.mxu0 %v1380_v13  ;;  %1231 = vmatprep.subr.bf16.mxu1 %v1380_v13  ;;  %v795_v45 = vld [vmem:[%s1845_s0 + $0xd0] sm:$0xff]  ;;  %v796_v47 = vld [vmem:[%s1845_s0 + $0xd8] sm:$0xff]  ;;  %v797_v49 = vld [vmem:[%s1845_s0 + $0xe0] sm:$0xff] }
   0xf   :  { %v43_v50 = vld [vmem:[%s1845_s0 + $0x68] sm:$0xff]  ;;  %v44_v52 = vld [vmem:[%s1845_s0 + $0x70] sm:$0xff]  ;;  %v45_v54 = vld [vmem:[%s1845_s0 + $0x78] sm:$0xff] }
  0x10   :  { %v798_v51 = vld [vmem:[%s1845_s0 + $0xe8] sm:$0xff]  ;;  %v799_v53 = vld [vmem:[%s1845_s0 + $0xf0] sm:$0xff]  ;;  %v800_v55 = vld [vmem:[%s1845_s0 + $0xf8] sm:$0xff] }
  0x11   :  { %1201 = vmatpush3.bf16.msra.mxu0 %v1380_v13  ;;  %1233 = vmatpush3.bf16.msra.mxu1 %v1380_v13  ;;  %v801_v56 = vld [vmem:[%s1845_s0 + $0x100] sm:$0xff]  ;;  %v802_v58 = vld [vmem:[%s1845_s0 + $0x108] sm:$0xff]  ;;  %v803_v60 = vld [vmem:[%s1845_s0 + $0x110] sm:$0xff] }
  0x12   :  { %1203 = vmatprep.subr.bf16.mxu0 %v1392_v16  ;;  %1235 = vmatprep.subr.bf16.mxu1 %v1392_v16  ;;  %v817_v57 = vld [vmem:[%s1845_s0 + $0x180] sm:$0xff]  ;;  %v818_v59 = vld [vmem:[%s1845_s0 + $0x188] sm:$0xff]  ;;  %v819_v61 = vld [vmem:[%s1845_s0 + $0x190] sm:$0xff] }
  0x13   :  { %v804_v62 = vld [vmem:[%s1845_s0 + $0x118] sm:$0xff]  ;;  %v805_v0 = vld [vmem:[%s1845_s0 + $0x120] sm:$0xff]  ;;  %v806_v2 = vld [vmem:[%s1845_s0 + $0x128] sm:$0xff] }
  0x14   :  { %v820_v63 = vld [vmem:[%s1845_s0 + $0x198] sm:$0xff]  ;;  %v821_v1 = vld [vmem:[%s1845_s0 + $0x1a0] sm:$0xff]  ;;  %v807_v4 = vld [vmem:[%s1845_s0 + $0x130] sm:$0xff] }
  0x15   :  { %1205 = vmatpush3.bf16.msra.mxu0 %v1392_v16  ;;  %1237 = vmatpush3.bf16.msra.mxu1 %v1392_v16  ;;  %v808_v6 = vld [vmem:[%s1845_s0 + $0x138] sm:$0xff]  ;;  %v825_v9 = vld [vmem:[%s1845_s0 + $0x1c0] sm:$0xff]  ;;  %v810_v10 = vld [vmem:[%s1845_s0 + $0x148] sm:$0xff] }
  0x16   :  { %1207 = vmatprep.subr.bf16.mxu0 %v1404_v19  ;;  %1239 = vmatprep.subr.bf16.mxu1 %v1404_v19  ;;  %v824_v7 = vld [vmem:[%s1845_s0 + $0x1b8] sm:$0xff]  ;;  %v826_v11 = vld [vmem:[%s1845_s0 + $0x1c8] sm:$0xff]  ;;  %v811_v12 = vld [vmem:[%s1845_s0 + $0x150] sm:$0xff] }
  0x17   :  { %v812_v14 = vld [vmem:[%s1845_s0 + $0x158] sm:$0xff]  ;;  %v829_v17 = vld [vmem:[%s1845_s0 + $0x1e0] sm:$0xff]  ;;  %v814_v18 = vld [vmem:[%s1845_s0 + $0x168] sm:$0xff] }
  0x18   :  { %v828_v15 = vld [vmem:[%s1845_s0 + $0x1d8] sm:$0xff]  ;;  %v815_v20 = vld [vmem:[%s1845_s0 + $0x170] sm:$0xff] }
  0x19   :  { %1209 = vmatpush3.bf16.msra.mxu0 %v1404_v19  ;;  %1241 = vmatpush3.bf16.msra.mxu1 %v1404_v19  ;;  %v831_v21 = vld [vmem:[%s1845_s0 + $0x1f0] sm:$0xff]  ;;  %v832_v23 = vld [vmem:[%s1845_s0 + $0x1f8] sm:$0xff] }
  0x1a   :  { %1211 = vmatprep.subr.bf16.mxu0 %v1416_v22  ;;  %1243 = vmatprep.subr.bf16.mxu1 %v1416_v22 }
  0x1d   :  { %1213 = vmatpush3.bf16.msra.mxu0 %v1416_v22  ;;  %1245 = vmatpush3.bf16.msra.mxu1 %v1416_v22 }
  0x1e   :  { %1215 = vmatprep.subr.bf16.mxu0 %v1428_v25  ;;  %1247 = vmatprep.subr.bf16.mxu1 %v1428_v25 }
  0x21   :  { %1217 = vmatpush3.bf16.msra.mxu0 %v1428_v25  ;;  %1249 = vmatpush3.bf16.msra.mxu1 %v1428_v25 }
  0x22   :  { %1251 = vmatprep.subr.bf16.mxu0 %v1343_v3  ;;  %1283 = vmatprep.subr.bf16.mxu1 %v1343_v3 }
  0x24   :  { %995 = vmatmul.mubr.f32.vlgmr.msra.gmra.mrb[0].mxu0 %v31_v26  ;;  %1051 = vmatmul.mubr.f32.vlgmr.msra.gmra.mrb[0].mxu1 %v786_v27 }
  0x25   :  { %1253 = vmatpush3.bf16.msra.mxu0 %v1343_v3  ;;  %997 = vmatprep.mubr.f32.mxu0 %v32_v28 }
  0x26   :  { %1053 = vmatprep.mubr.f32.mxu1 %v787_v29  ;;  %1285 = vmatpush3.bf16.msra.mxu1 %v1343_v3  ;;  %v822_v3 = vld [vmem:[%s1845_s0 + $0x1a8] sm:$0xff] }
  0x27   :  { %1255 = vmatprep.subr.bf16.mxu0 %v1348_v5  ;;  %1287 = vmatprep.subr.bf16.mxu1 %v1348_v5 }
  0x28   :  { %998 = vmatmul.mubr.f32.gmra.mrb[2].mxu0 %v33_v30  ;;  %1054 = vmatmul.mubr.f32.gmra.mrb[2].mxu1 %v788_v31 }
  0x29   :  { %1257 = vmatpush3.bf16.msra.mxu0 %v1348_v5  ;;  %1000 = vmatprep.mubr.f32.mxu0 %v34_v32 }
  0x2a   :  { %1056 = vmatprep.mubr.f32.mxu1 %v789_v33  ;;  %1289 = vmatpush3.bf16.msra.mxu1 %v1348_v5  ;;  %v823_v5 = vld [vmem:[%s1845_s0 + $0x1b0] sm:$0xff] }
  0x2b   :  { %1259 = vmatprep.subr.bf16.mxu0 %v1362_v8  ;;  %1291 = vmatprep.subr.bf16.mxu1 %v1362_v8 }
  0x2c   :  { %1001 = vmatmul.mubr.f32.gmra.mrb[4].mxu0 %v35_v34  ;;  %1057 = vmatmul.mubr.f32.gmra.mrb[4].mxu1 %v790_v35 }
  0x2d   :  { %1261 = vmatpush3.bf16.msra.mxu0 %v1362_v8  ;;  %1003 = vmatprep.mubr.f32.mxu0 %v36_v36 }
  0x2e   :  { %1059 = vmatprep.mubr.f32.mxu1 %v791_v37  ;;  %1293 = vmatpush3.bf16.msra.mxu1 %v1362_v8  ;;  %v809_v8 = vld [vmem:[%s1845_s0 + $0x140] sm:$0xff] }
  0x2f   :  { %1263 = vmatprep.subr.bf16.mxu0 %v1380_v13  ;;  %1295 = vmatprep.subr.bf16.mxu1 %v1380_v13 }
  0x30   :  { %1004 = vmatmul.mubr.f32.gmra.mrb[6].mxu0 %v37_v38  ;;  %1060 = vmatmul.mubr.f32.gmra.mrb[6].mxu1 %v792_v39 }
  0x31   :  { %1265 = vmatpush3.bf16.msra.mxu0 %v1380_v13  ;;  %1006 = vmatprep.mubr.f32.mxu0 %v38_v40 }
  0x32   :  { %1062 = vmatprep.mubr.f32.mxu1 %v793_v41  ;;  %1297 = vmatpush3.bf16.msra.mxu1 %v1380_v13  ;;  %v827_v13 = vld [vmem:[%s1845_s0 + $0x1d0] sm:$0xff] }
  0x33   :  { %1267 = vmatprep.subr.bf16.mxu0 %v1392_v16  ;;  %1299 = vmatprep.subr.bf16.mxu1 %v1392_v16 }
  0x34   :  { %1007 = vmatmul.mubr.f32.gmra.mrb[8].mxu0 %v39_v42  ;;  %1063 = vmatmul.mubr.f32.gmra.mrb[8].mxu1 %v794_v43 }
  0x35   :  { %1269 = vmatpush3.bf16.msra.mxu0 %v1392_v16  ;;  %1009 = vmatprep.mubr.f32.mxu0 %v40_v44 }
  0x36   :  { %1065 = vmatprep.mubr.f32.mxu1 %v795_v45  ;;  %1301 = vmatpush3.bf16.msra.mxu1 %v1392_v16  ;;  %v813_v16 = vld [vmem:[%s1845_s0 + $0x160] sm:$0xff] }
  0x37   :  { %1271 = vmatprep.subr.bf16.mxu0 %v1404_v19  ;;  %1303 = vmatprep.subr.bf16.mxu1 %v1404_v19 }
  0x38   :  { %1010 = vmatmul.mubr.f32.gmra.mrb[10].mxu0 %v41_v46  ;;  %1066 = vmatmul.mubr.f32.gmra.mrb[10].mxu1 %v796_v47 }
  0x39   :  { %1273 = vmatpush3.bf16.msra.mxu0 %v1404_v19  ;;  %1012 = vmatprep.mubr.f32.mxu0 %v42_v48 }
  0x3a   :  { %1068 = vmatprep.mubr.f32.mxu1 %v797_v49  ;;  %1305 = vmatpush3.bf16.msra.mxu1 %v1404_v19  ;;  %v830_v19 = vld [vmem:[%s1845_s0 + $0x1e8] sm:$0xff] }
  0x3b   :  { %1275 = vmatprep.subr.bf16.mxu0 %v1416_v22  ;;  %1307 = vmatprep.subr.bf16.mxu1 %v1416_v22 }
  0x3c   :  { %1013 = vmatmul.mubr.f32.gmra.mrb[12].mxu0 %v43_v50  ;;  %1069 = vmatmul.mubr.f32.gmra.mrb[12].mxu1 %v798_v51 }
  0x3d   :  { %1277 = vmatpush3.bf16.msra.mxu0 %v1416_v22  ;;  %1015 = vmatprep.mubr.f32.mxu0 %v44_v52 }
  0x3e   :  { %1071 = vmatprep.mubr.f32.mxu1 %v799_v53  ;;  %1309 = vmatpush3.bf16.msra.mxu1 %v1416_v22  ;;  %v816_v22 = vld [vmem:[%s1845_s0 + $0x178] sm:$0xff] }
  0x3f   :  { %1279 = vmatprep.subr.bf16.mxu0 %v1428_v25  ;;  %1311 = vmatprep.subr.bf16.mxu1 %v1428_v25 }
  0x40   :  { %1016 = vmatmul.mubr.f32.gmra.mrb[14].mxu0 %v45_v54  ;;  %1072 = vmatmul.mubr.f32.gmra.mrb[14].mxu1 %v800_v55 }
  0x41   :  { %1281 = vmatpush3.bf16.msra.mxu0 %v1428_v25  ;;  %1106 = vmatprep.mubr.f32.mxu0 %v801_v56 }
  0x42   :  { %1313 = vmatpush3.bf16.msra.mxu1 %v1428_v25  ;;  %1162 = vmatprep.mubr.f32.mxu1 %v817_v57 }
  0x44   :  { %1107 = vmatmul.mubr.f32.vlgmr.msra.gmra.mrb[16].mxu0 %v802_v58 }
  0x45   :  { %1163 = vmatmul.mubr.f32.vlgmr.msra.gmra.mrb[16].mxu1 %v818_v59  ;;  %1109 = vmatprep.mubr.f32.mxu0 %v803_v60 }
  0x46   :  { %1165 = vmatprep.mubr.f32.mxu1 %v819_v61 }
  0x48   :  { %1110 = vmatmul.mubr.f32.gmra.mrb[18].mxu0 %v804_v62 }
  0x49   :  { %1166 = vmatmul.mubr.f32.gmra.mrb[18].mxu1 %v820_v63  ;;  %1112 = vmatprep.mubr.f32.mxu0 %v805_v0 }
  0x4a   :  { %1168 = vmatprep.mubr.f32.mxu1 %v821_v1 }
  0x4c   :  { %1113 = vmatmul.mubr.f32.gmra.mrb[20].mxu0 %v806_v2 }
  0x4d   :  { %1169 = vmatmul.mubr.f32.gmra.mrb[20].mxu1 %v822_v3  ;;  %1115 = vmatprep.mubr.f32.mxu0 %v807_v4 }
  0x4e   :  { %1171 = vmatprep.mubr.f32.mxu1 %v823_v5 }
  0x50   :  { %1116 = vmatmul.mubr.f32.gmra.mrb[22].mxu0 %v808_v6 }
  0x51   :  { %1172 = vmatmul.mubr.f32.gmra.mrb[22].mxu1 %v824_v7  ;;  %1118 = vmatprep.mubr.f32.mxu0 %v809_v8 }
  0x52   :  { %1174 = vmatprep.mubr.f32.mxu1 %v825_v9 }
  0x54   :  { %1119 = vmatmul.mubr.f32.gmra.mrb[24].mxu0 %v810_v10 }
  0x55   :  { %1175 = vmatmul.mubr.f32.gmra.mrb[24].mxu1 %v826_v11  ;;  %1121 = vmatprep.mubr.f32.mxu0 %v811_v12 }
  0x56   :  { %1177 = vmatprep.mubr.f32.mxu1 %v827_v13  ;;  %v1729_v13 = vld [vmem:[%s1846_s2] ss:$0 sm:$0xff] }
  0x58   :  { %1122 = vmatmul.mubr.f32.gmra.mrb[26].mxu0 %v812_v14 }
  0x59   :  { %1178 = vmatmul.mubr.f32.gmra.mrb[26].mxu1 %v828_v15  ;;  %1124 = vmatprep.mubr.f32.mxu0 %v813_v16 }
  0x5a   :  { %1180 = vmatprep.mubr.f32.mxu1 %v829_v17 }
  0x5c   :  { %1125 = vmatmul.mubr.f32.gmra.mrb[28].mxu0 %v814_v18 }
  0x5d   :  { %1181 = vmatmul.mubr.f32.gmra.mrb[28].mxu1 %v830_v19  ;;  %1127 = vmatprep.mubr.f32.mxu0 %v815_v20 }
  0x5e   :  { %1183 = vmatprep.mubr.f32.mxu1 %v831_v21 }
  0x60   :  { %1128 = vmatmul.mubr.f32.gmra.mrb[30].mxu0 %v816_v22 }
  0x61   :  { %1184 = vmatmul.mubr.f32.gmra.mrb[30].mxu1 %v832_v23 }
  0xf7   :  { %v996_v24 = vpop.f32.mrb[0].mxu0  ;;  %v1052_v25 = vpop.f32.mrb[0].mxu1 }
  0xf8   :  { %v354_v26 = vmax.f32 %v996_v24, %v1052_v25  ;;  %v112_v27 = vpop.f32.mrb[1].mxu0  ;;  %v274_v28 = vpop.f32.mrb[1].mxu1 }
  0xf9   :  { %v353_v29 = vmax.f32 %v112_v27, %v274_v28 }
  0xfb   :  { %v999_v30 = vpop.f32.mrb[2].mxu0  ;;  %v1055_v31 = vpop.f32.mrb[2].mxu1 }
  0xfc   :  { %v356_v32 = vmax.f32 %v999_v30, %v1055_v31  ;;  %v122_v33 = vpop.f32.mrb[3].mxu0  ;;  %v284_v34 = vpop.f32.mrb[3].mxu1 }
  0xfd   :  { %v355_v35 = vmax.f32 %v122_v33, %v284_v34 }
  0xff   :  { %v1654_v36 = vpop.f32.mrb[4].mxu0  ;;  %v1656_v37 = vpop.f32.mrb[4].mxu1 }
 0x100   :  { %v358_v38 = vmax.f32 %v1654_v36, %v1656_v37  ;;  %v1660_v39 = vpop.f32.mrb[5].mxu0  ;;  %v1662_v40 = vpop.f32.mrb[5].mxu1 }
 0x101   :  { %v357_v41 = vmax.f32 %v1660_v39, %v1662_v40 }
 0x103   :  { %v1666_v42 = vpop.f32.mrb[6].mxu0  ;;  %v1668_v43 = vpop.f32.mrb[6].mxu1 }
 0x104   :  { %v360_v44 = vmax.f32 %v1666_v42, %v1668_v43  ;;  %v1672_v45 = vpop.f32.mrb[7].mxu0  ;;  %v1674_v46 = vpop.f32.mrb[7].mxu1 }
 0x105   :  { %v359_v47 = vmax.f32 %v1672_v45, %v1674_v46 }
 0x107   :  { %v1678_v48 = vpop.f32.mrb[8].mxu0  ;;  %v1680_v49 = vpop.f32.mrb[8].mxu1 }
 0x108   :  { %v362_v50 = vmax.f32 %v1678_v48, %v1680_v49  ;;  %v1684_v51 = vpop.f32.mrb[9].mxu0  ;;  %v1686_v52 = vpop.f32.mrb[9].mxu1 }
 0x109   :  { %v361_v53 = vmax.f32 %v1684_v51, %v1686_v52 }
 0x10b   :  { %v1690_v54 = vpop.f32.mrb[10].mxu0  ;;  %v1692_v55 = vpop.f32.mrb[10].mxu1 }
 0x10c   :  { %v364_v56 = vmax.f32 %v1690_v54, %v1692_v55  ;;  %v1696_v57 = vpop.f32.mrb[11].mxu0  ;;  %v1698_v58 = vpop.f32.mrb[11].mxu1 }
 0x10d   :  { %v363_v59 = vmax.f32 %v1696_v57, %v1698_v58 }
 0x10f   :  { %v1702_v60 = vpop.f32.mrb[12].mxu0  ;;  %v1704_v61 = vpop.f32.mrb[12].mxu1 }
 0x110   :  { %v366_v62 = vmax.f32 %v1702_v60, %v1704_v61  ;;  %v1708_v63 = vpop.f32.mrb[13].mxu0  ;;  %v1710_v0 = vpop.f32.mrb[13].mxu1 }
 0x111   :  { %v365_v1 = vmax.f32 %v1708_v63, %v1710_v0 }
 0x113   :  { %v1714_v2 = vpop.f32.mrb[14].mxu0  ;;  %v1716_v3 = vpop.f32.mrb[14].mxu1 }
 0x114   :  { %v368_v4 = vmax.f32 %v1714_v2, %v1716_v3  ;;  %v1720_v5 = vpop.f32.mrb[15].mxu0  ;;  %v1722_v6 = vpop.f32.mrb[15].mxu1 }
 0x115   :  { %v367_v7 = vmax.f32 %v1720_v5, %v1722_v6 }
 0x117   :  { %v1108_v8 = vpop.f32.mrb[16].mxu0 }
 0x118   :  { %v532_v9 = vmax.f32 %v354_v26, %v1108_v8  ;;  %v452_v10 = vpop.f32.mrb[17].mxu0  ;;  %v1164_v11 = vpop.f32.mrb[16].mxu1 }
 0x119   :  { %v531_v12 = vmax.f32 %v353_v29, %v452_v10  ;;  %v630_v14 = vpop.f32.mrb[17].mxu1 }
 0x11a   :  { %v710_v15 = vmax.f32 %v532_v9, %v1164_v11 }
 0x11b   :  { %v709_v16 = vmax.f32 %v531_v12, %v630_v14  ;;  %v1111_v17 = vpop.f32.mrb[18].mxu0 }
 0x11c   :  { %v733_v18 = vadd.f32 %v1729_v13, %v710_v15  ;;  %v534_v19 = vmax.f32 %v356_v32, %v1111_v17  ;;  %v462_v20 = vpop.f32.mrb[19].mxu0  ;;  %v1167_v21 = vpop.f32.mrb[18].mxu1 }
 0x11d   :  { %v732_v22 = vadd.f32 %v1729_v13, %v709_v16  ;;  %v533_v23 = vmax.f32 %v355_v35, %v462_v20  ;;  %v640_v24 = vpop.f32.mrb[19].mxu1 }
 0x11e   :  { %v749_v25 = vmax.f32 %v733_v18, 0.0  ;;  %v712_v26 = vmax.f32 %v534_v19, %v1167_v21 }
 0x11f   :  { %v748_v27 = vmax.f32 %v732_v22, 0.0  ;;  %v711_v28 = vmax.f32 %v533_v23, %v640_v24  ;;  %v1114_v29 = vpop.f32.mrb[20].mxu0 }
 0x120   :  { %766 = vst.msk [vmem:[%s1847_s3 + $0x8] sm:$0xff] %vm764_vm0, %v749_v25  ;;  %v735_v30 = vadd.f32 %v1729_v13, %v712_v26  ;;  %v536_v31 = vmax.f32 %v358_v38, %v1114_v29  ;;  %v472_v32 = vpop.f32.mrb[21].mxu0  ;;  %v1170_v33 = vpop.f32.mrb[20].mxu1 }
 0x121   :  { %765 = vst.msk [vmem:[%s1847_s3] sm:$0xff] %vm764_vm0, %v748_v27  ;;  %v734_v34 = vadd.f32 %v1729_v13, %v711_v28  ;;  %v535_v35 = vmax.f32 %v357_v41, %v472_v32  ;;  %v650_v36 = vpop.f32.mrb[21].mxu1 }
 0x122   :  { %v751_v37 = vmax.f32 %v735_v30, 0.0  ;;  %v714_v8 = vmax.f32 %v536_v31, %v1170_v33 }
 0x123   :  { %v750_v9 = vmax.f32 %v734_v34, 0.0  ;;  %v713_v10 = vmax.f32 %v535_v35, %v650_v36  ;;  %v1117_v11 = vpop.f32.mrb[22].mxu0 }
 0x124   :  { %768 = vst.msk [vmem:[%s1847_s3 + $0x18] sm:$0xff] %vm764_vm0, %v751_v37  ;;  %v737_v38 = vadd.f32 %v1729_v13, %v714_v8  ;;  %v538_v12 = vmax.f32 %v360_v44, %v1117_v11  ;;  %v482_v14 = vpop.f32.mrb[23].mxu0  ;;  %v1173_v39 = vpop.f32.mrb[22].mxu1 }
 0x125   :  { %767 = vst.msk [vmem:[%s1847_s3 + $0x10] sm:$0xff] %vm764_vm0, %v750_v9  ;;  %v736_v40 = vadd.f32 %v1729_v13, %v713_v10  ;;  %v537_v41 = vmax.f32 %v359_v47, %v482_v14  ;;  %v660_v15 = vpop.f32.mrb[23].mxu1 }
 0x126   :  { %v753_v16 = vmax.f32 %v737_v38, 0.0  ;;  %v716_v17 = vmax.f32 %v538_v12, %v1173_v39 }
 0x127   :  { %v752_v18 = vmax.f32 %v736_v40, 0.0  ;;  %v715_v19 = vmax.f32 %v537_v41, %v660_v15  ;;  %v1120_v42 = vpop.f32.mrb[24].mxu0 }
 0x128   :  { %770 = vst.msk [vmem:[%s1847_s3 + $0x28] sm:$0xff] %vm764_vm0, %v753_v16  ;;  %v739_v43 = vadd.f32 %v1729_v13, %v716_v17  ;;  %v540_v44 = vmax.f32 %v362_v50, %v1120_v42  ;;  %v492_v20 = vpop.f32.mrb[25].mxu0  ;;  %v1176_v45 = vpop.f32.mrb[24].mxu1 }
 0x129   :  { %769 = vst.msk [vmem:[%s1847_s3 + $0x20] sm:$0xff] %vm764_vm0, %v752_v18  ;;  %v738_v46 = vadd.f32 %v1729_v13, %v715_v19  ;;  %v539_v47 = vmax.f32 %v361_v53, %v492_v20  ;;  %v670_v21 = vpop.f32.mrb[25].mxu1 }
 0x12a   :  { %v755_v22 = vmax.f32 %v739_v43, 0.0  ;;  %v718_v23 = vmax.f32 %v540_v44, %v1176_v45 }
 0x12b   :  { %v754_v24 = vmax.f32 %v738_v46, 0.0  ;;  %v717_v25 = vmax.f32 %v539_v47, %v670_v21  ;;  %v1123_v48 = vpop.f32.mrb[26].mxu0 }
 0x12c   :  { %772 = vst.msk [vmem:[%s1847_s3 + $0x38] sm:$0xff] %vm764_vm0, %v755_v22  ;;  %v741_v49 = vadd.f32 %v1729_v13, %v718_v23  ;;  %v542_v50 = vmax.f32 %v364_v56, %v1123_v48  ;;  %v502_v26 = vpop.f32.mrb[27].mxu0  ;;  %v1179_v51 = vpop.f32.mrb[26].mxu1 }
 0x12d   :  { %771 = vst.msk [vmem:[%s1847_s3 + $0x30] sm:$0xff] %vm764_vm0, %v754_v24  ;;  %v740_v52 = vadd.f32 %v1729_v13, %v717_v25  ;;  %v541_v53 = vmax.f32 %v363_v59, %v502_v26  ;;  %v680_v27 = vpop.f32.mrb[27].mxu1 }
 0x12e   :  { %v757_v28 = vmax.f32 %v741_v49, 0.0  ;;  %v720_v29 = vmax.f32 %v542_v50, %v1179_v51 }
 0x12f   :  { %v756_v30 = vmax.f32 %v740_v52, 0.0  ;;  %v719_v31 = vmax.f32 %v541_v53, %v680_v27  ;;  %v1126_v54 = vpop.f32.mrb[28].mxu0 }
 0x130   :  { %774 = vst.msk [vmem:[%s1847_s3 + $0x48] sm:$0xff] %vm764_vm0, %v757_v28  ;;  %v743_v55 = vadd.f32 %v1729_v13, %v720_v29  ;;  %v544_v56 = vmax.f32 %v366_v62, %v1126_v54  ;;  %v512_v32 = vpop.f32.mrb[29].mxu0  ;;  %v1182_v57 = vpop.f32.mrb[28].mxu1 }
 0x131   :  { %773 = vst.msk [vmem:[%s1847_s3 + $0x40] sm:$0xff] %vm764_vm0, %v756_v30  ;;  %v742_v58 = vadd.f32 %v1729_v13, %v719_v31  ;;  %v543_v59 = vmax.f32 %v365_v1, %v512_v32  ;;  %v690_v33 = vpop.f32.mrb[29].mxu1 }
 0x132   :  { %v759_v34 = vmax.f32 %v743_v55, 0.0  ;;  %v722_v35 = vmax.f32 %v544_v56, %v1182_v57 }
 0x133   :  { %v758_v36 = vmax.f32 %v742_v58, 0.0  ;;  %v721_v37 = vmax.f32 %v543_v59, %v690_v33  ;;  %v1129_v60 = vpop.f32.mrb[30].mxu0 }
 0x134   :  { %776 = vst.msk [vmem:[%s1847_s3 + $0x58] sm:$0xff] %vm764_vm0, %v759_v34  ;;  %v745_v61 = vadd.f32 %v1729_v13, %v722_v35  ;;  %v546_v62 = vmax.f32 %v368_v4, %v1129_v60  ;;  %v522_v8 = vpop.f32.mrb[31].mxu0  ;;  %v1185_v63 = vpop.f32.mrb[30].mxu1 }
 0x135   :  { %775 = vst.msk [vmem:[%s1847_s3 + $0x50] sm:$0xff] %vm764_vm0, %v758_v36  ;;  %v744_v0 = vadd.f32 %v1729_v13, %v721_v37  ;;  %v545_v1 = vmax.f32 %v367_v7, %v522_v8  ;;  %v700_v9 = vpop.f32.mrb[31].mxu1 }
 0x136   :  { %v761_v10 = vmax.f32 %v745_v61, 0.0  ;;  %v724_v11 = vmax.f32 %v546_v62, %v1185_v63 }
 0x137   :  { %v760_v38 = vmax.f32 %v744_v0, 0.0  ;;  %v723_v12 = vmax.f32 %v545_v1, %v700_v9 }
 0x138   :  { %778 = vst.msk [vmem:[%s1847_s3 + $0x68] sm:$0xff] %vm764_vm0, %v761_v10  ;;  %v747_v2 = vadd.f32 %v1729_v13, %v724_v11 }
 0x139   :  { %777 = vst.msk [vmem:[%s1847_s3 + $0x60] sm:$0xff] %vm764_vm0, %v760_v38  ;;  %v746_v3 = vadd.f32 %v1729_v13, %v723_v12 }
 0x13a   :  { %v763_v4 = vmax.f32 %v747_v2, 0.0 }
 0x13b   :  { %v762_v5 = vmax.f32 %v746_v3, 0.0 }
 0x13c   :  { %780 = vst.msk [vmem:[%s1847_s3 + $0x78] sm:$0xff] %vm764_vm0, %v763_v4 }
 0x13d   :  { %779 = vst.msk [vmem:[%s1847_s3 + $0x70] sm:$0xff] %vm764_vm0, %v762_v5 }

// kernel: cnn_forward.4
= control target key start
LH: loop header
LB: loop body
LE: loop exit
PB: predicated region body
PF: predicated region fallthrough
CT: control target
= control target key end

     0   :  { %vm448_vm0 = vcmask 261120   ;;  %s1113_s1 = inlined_call_operand.vmem [shape: f32[256,32], index: 1, kind: input, shape index: {}]   ;;  %s1114_s0 = inlined_call_operand.vmem [shape: f32[4,32,256], index: 0, kind: input, shape index: {}]   ;;  %s1115_s2 = inlined_call_operand.vmem [shape: f32[1,32], index: 2, kind: input, shape index: {}]   ;;  %s1116_s3 = inlined_call_operand.vmem [shape: f32[32,32], index: 3, kind: output, shape index: {}]  }
   0x1   :  { %v30_v0 = vld [vmem:[%s1113_s1 + $0x80] sm:$0xff]  ;;  %v31_v1 = vld [vmem:[%s1113_s1 + $0x88] sm:$0xff]  ;;  %v32_v5 = vld [vmem:[%s1113_s1 + $0x90] sm:$0xff] }
   0x2   :  { %v14_v2 = vld [vmem:[%s1113_s1] sm:$0xff]  ;;  %v815_v3 = vpack.c.bf16 %v31_v1, %v30_v0  ;;  %v15_v4 = vld [vmem:[%s1113_s1 + $0x8] sm:$0xff]  ;;  %v33_v6 = vld [vmem:[%s1113_s1 + $0x98] sm:$0xff] }
   0x3   :  { %v826_v7 = vpack.c.bf16 %v15_v4, %v14_v2  ;;  %v828_v8 = vpack.c.bf16 %v33_v6, %v32_v5  ;;  %v16_v9 = vld [vmem:[%s1113_s1 + $0x10] sm:$0xff]  ;;  %v17_v10 = vld [vmem:[%s1113_s1 + $0x18] sm:$0xff]  ;;  %v34_v11 = vld [vmem:[%s1113_s1 + $0xa0] sm:$0xff] }
   0x4   :  { %659 = vmatprep.subr.bf16.mxu0 %v815_v3  ;;  %691 = vmatprep.subr.bf16.mxu1 %v815_v3  ;;  %v35_v12 = vld [vmem:[%s1113_s1 + $0xa8] sm:$0xff]  ;;  %v846_v13 = vpack.c.bf16 %v17_v10, %v16_v9  ;;  %v18_v15 = vld [vmem:[%s1113_s1 + $0x20] sm:$0xff]  ;;  %v36_v17 = vld [vmem:[%s1113_s1 + $0xb0] sm:$0xff] }
   0x5   :  { %661 = vmatpush3.bf16.msra.mxu0 %v826_v7  ;;  %693 = vmatpush3.bf16.msra.mxu1 %v826_v7  ;;  %v850_v14 = vpack.c.bf16 %v35_v12, %v34_v11  ;;  %v19_v16 = vld [vmem:[%s1113_s1 + $0x28] sm:$0xff]  ;;  %v37_v18 = vld [vmem:[%s1113_s1 + $0xb8] sm:$0xff]  ;;  %v20_v21 = vld [vmem:[%s1113_s1 + $0x30] sm:$0xff] }
   0x6   :  { %663 = vmatprep.subr.bf16.mxu0 %v828_v8  ;;  %695 = vmatprep.subr.bf16.mxu1 %v828_v8  ;;  %v866_v19 = vpack.c.bf16 %v19_v16, %v18_v15  ;;  %v870_v20 = vpack.c.bf16 %v37_v18, %v36_v17  ;;  %v21_v22 = vld [vmem:[%s1113_s1 + $0x38] sm:$0xff]  ;;  %v38_v23 = vld [vmem:[%s1113_s1 + $0xc0] sm:$0xff]  ;;  %v39_v24 = vld [vmem:[%s1113_s1 + $0xc8] sm:$0xff] }
   0x7   :  { %v47_v25 = vld [vmem:[%s1114_s0 + $0x8] sm:$0xff]  ;;  %v892_v27 = vpack.c.bf16 %v21_v22, %v20_v21  ;;  %v896_v28 = vpack.c.bf16 %v39_v24, %v38_v23  ;;  %v22_v29 = vld [vmem:[%s1113_s1 + $0x40] sm:$0xff]  ;;  %v40_v31 = vld [vmem:[%s1113_s1 + $0xd0] sm:$0xff] }
   0x8   :  { %118 = vmatprep.mubr.f32.mxu0 %v47_v25  ;;  %v458_v26 = vld [vmem:[%s1114_s0 + $0x48] sm:$0xff]  ;;  %v41_v32 = vld [vmem:[%s1113_s1 + $0xd8] sm:$0xff]  ;;  %v24_v35 = vld [vmem:[%s1113_s1 + $0x50] sm:$0xff] }
   0x9   :  { %665 = vmatpush3.bf16.msra.mxu0 %v846_v13  ;;  %697 = vmatpush3.bf16.msra.mxu1 %v846_v13  ;;  %v23_v30 = vld [vmem:[%s1113_s1 + $0x48] sm:$0xff]  ;;  %v916_v34 = vpack.c.bf16 %v41_v32, %v40_v31  ;;  %v25_v36 = vld [vmem:[%s1113_s1 + $0x58] sm:$0xff]  ;;  %v42_v37 = vld [vmem:[%s1113_s1 + $0xe0] sm:$0xff] }
   0xa   :  { %667 = vmatprep.subr.bf16.mxu0 %v850_v14  ;;  %699 = vmatprep.subr.bf16.mxu1 %v850_v14  ;;  %v912_v33 = vpack.c.bf16 %v23_v30, %v22_v29  ;;  %v43_v38 = vld [vmem:[%s1113_s1 + $0xe8] sm:$0xff]  ;;  %v932_v39 = vpack.c.bf16 %v25_v36, %v24_v35  ;;  %v26_v41 = vld [vmem:[%s1113_s1 + $0x60] sm:$0xff]  ;;  %v44_v43 = vld [vmem:[%s1113_s1 + $0xf0] sm:$0xff] }
   0xb   :  { %212 = vmatprep.mubr.f32.mxu1 %v458_v26  ;;  %v936_v40 = vpack.c.bf16 %v43_v38, %v42_v37  ;;  %v27_v42 = vld [vmem:[%s1113_s1 + $0x68] sm:$0xff]  ;;  %v45_v44 = vld [vmem:[%s1113_s1 + $0xf8] sm:$0xff]  ;;  %v28_v47 = vld [vmem:[%s1113_s1 + $0x70] sm:$0xff] }
   0xc   :  { %v952_v45 = vpack.c.bf16 %v27_v42, %v26_v41  ;;  %v956_v46 = vpack.c.bf16 %v45_v44, %v44_v43  ;;  %v29_v48 = vld [vmem:[%s1113_s1 + $0x78] sm:$0xff]  ;;  %v46_v50 = vld [vmem:[%s1114_s0] sm:$0xff]  ;;  %v48_v54 = vld [vmem:[%s1114_s0 + $0x10] sm:$0xff] }
   0xd   :  { %669 = vmatpush3.bf16.msra.mxu0 %v866_v19  ;;  %701 = vmatpush3.bf16.msra.mxu1 %v866_v19  ;;  %v966_v49 = vpack.c.bf16 %v29_v48, %v28_v47  ;;  %v457_v51 = vld [vmem:[%s1114_s0 + $0x40] sm:$0xff]  ;;  %v49_v52 = vld [vmem:[%s1114_s0 + $0x18] sm:$0xff]  ;;  %v459_v55 = vld [vmem:[%s1114_s0 + $0x50] sm:$0xff] }
   0xe   :  { %671 = vmatprep.subr.bf16.mxu0 %v870_v20  ;;  %703 = vmatprep.subr.bf16.mxu1 %v870_v20  ;;  %v460_v53 = vld [vmem:[%s1114_s0 + $0x58] sm:$0xff]  ;;  %v51_v56 = vld [vmem:[%s1114_s0 + $0x28] sm:$0xff]  ;;  %v50_v58 = vld [vmem:[%s1114_s0 + $0x20] sm:$0xff] }
   0xf   :  { %v462_v57 = vld [vmem:[%s1114_s0 + $0x68] sm:$0xff]  ;;  %v461_v59 = vld [vmem:[%s1114_s0 + $0x60] sm:$0xff]  ;;  %v53_v60 = vld [vmem:[%s1114_s0 + $0x38] sm:$0xff] }
  0x10   :  { %v464_v61 = vld [vmem:[%s1114_s0 + $0x78] sm:$0xff]  ;;  %v52_v62 = vld [vmem:[%s1114_s0 + $0x30] sm:$0xff]  ;;  %v466_v0 = vld [vmem:[%s1114_s0 + $0x88] sm:$0xff] }
  0x11   :  { %673 = vmatpush3.bf16.msra.mxu0 %v892_v27  ;;  %705 = vmatpush3.bf16.msra.mxu1 %v892_v27  ;;  %v463_v63 = vld [vmem:[%s1114_s0 + $0x70] sm:$0xff]  ;;  %v474_v1 = vld [vmem:[%s1114_s0 + $0xc8] sm:$0xff]  ;;  %v465_v2 = vld [vmem:[%s1114_s0 + $0x80] sm:$0xff] }
  0x12   :  { %675 = vmatprep.subr.bf16.mxu0 %v896_v28  ;;  %707 = vmatprep.subr.bf16.mxu1 %v896_v28  ;;  %v468_v4 = vld [vmem:[%s1114_s0 + $0x98] sm:$0xff]  ;;  %v467_v6 = vld [vmem:[%s1114_s0 + $0x90] sm:$0xff]  ;;  %v478_v9 = vld [vmem:[%s1114_s0 + $0xe8] sm:$0xff] }
  0x13   :  { %v476_v5 = vld [vmem:[%s1114_s0 + $0xd8] sm:$0xff]  ;;  %v469_v10 = vld [vmem:[%s1114_s0 + $0xa0] sm:$0xff]  ;;  %v479_v15 = vld [vmem:[%s1114_s0 + $0xf0] sm:$0xff] }
  0x14   :  { %v477_v11 = vld [vmem:[%s1114_s0 + $0xe0] sm:$0xff]  ;;  %v472_v12 = vld [vmem:[%s1114_s0 + $0xb8] sm:$0xff] }
  0x15   :  { %677 = vmatpush3.bf16.msra.mxu0 %v912_v33  ;;  %709 = vmatpush3.bf16.msra.mxu1 %v912_v33 }
  0x16   :  { %679 = vmatprep.subr.bf16.mxu0 %v916_v34  ;;  %711 = vmatprep.subr.bf16.mxu1 %v916_v34 }
  0x19   :  { %681 = vmatpush3.bf16.msra.mxu0 %v932_v39  ;;  %713 = vmatpush3.bf16.msra.mxu1 %v932_v39 }
  0x1a   :  { %683 = vmatprep.subr.bf16.mxu0 %v936_v40  ;;  %715 = vmatprep.subr.bf16.mxu1 %v936_v40 }
  0x1d   :  { %685 = vmatpush3.bf16.msra.mxu0 %v952_v45  ;;  %717 = vmatpush3.bf16.msra.mxu1 %v952_v45 }
  0x1e   :  { %687 = vmatprep.subr.bf16.mxu0 %v956_v46  ;;  %719 = vmatprep.subr.bf16.mxu1 %v956_v46 }
  0x21   :  { %689 = vmatpush3.bf16.msra.mxu0 %v966_v49  ;;  %721 = vmatpush3.bf16.msra.mxu1 %v966_v49 }
  0x22   :  { %723 = vmatprep.subr.bf16.mxu0 %v815_v3  ;;  %755 = vmatprep.subr.bf16.mxu1 %v815_v3  ;;  %v473_v3 = vld [vmem:[%s1114_s0 + $0xc0] sm:$0xff] }
  0x24   :  { %119 = vmatmul.mubr.f32.vlgmr.msra.gmra.mrb[0].mxu0 %v46_v50  ;;  %213 = vmatmul.mubr.f32.vlgmr.msra.gmra.mrb[0].mxu1 %v457_v51 }
  0x25   :  { %725 = vmatpush3.bf16.msra.mxu0 %v826_v7  ;;  %757 = vmatpush3.bf16.msra.mxu1 %v826_v7  ;;  %v475_v7 = vld [vmem:[%s1114_s0 + $0xd0] sm:$0xff] }
  0x26   :  { %727 = vmatprep.subr.bf16.mxu0 %v828_v8  ;;  %759 = vmatprep.subr.bf16.mxu1 %v828_v8  ;;  %v470_v8 = vld [vmem:[%s1114_s0 + $0xa8] sm:$0xff] }
  0x27   :  { %123 = vmatprep.mubr.f32.mxu0 %v49_v52  ;;  %217 = vmatprep.mubr.f32.mxu1 %v460_v53  ;;  %v481_v53 = vld [vmem:[%s1115_s2] ss:$0 sm:$0xff] }
  0x28   :  { %124 = vmatmul.mubr.f32.gmra.mrb[2].mxu0 %v48_v54  ;;  %218 = vmatmul.mubr.f32.gmra.mrb[2].mxu1 %v459_v55 }
  0x29   :  { %729 = vmatpush3.bf16.msra.mxu0 %v846_v13  ;;  %761 = vmatpush3.bf16.msra.mxu1 %v846_v13  ;;  %v480_v13 = vld [vmem:[%s1114_s0 + $0xf8] sm:$0xff] }
  0x2a   :  { %731 = vmatprep.subr.bf16.mxu0 %v850_v14  ;;  %763 = vmatprep.subr.bf16.mxu1 %v850_v14  ;;  %v471_v14 = vld [vmem:[%s1114_s0 + $0xb0] sm:$0xff] }
  0x2b   :  { %128 = vmatprep.mubr.f32.mxu0 %v51_v56  ;;  %222 = vmatprep.mubr.f32.mxu1 %v462_v57 }
  0x2c   :  { %129 = vmatmul.mubr.f32.gmra.mrb[4].mxu0 %v50_v58  ;;  %223 = vmatmul.mubr.f32.gmra.mrb[4].mxu1 %v461_v59 }
  0x2d   :  { %733 = vmatpush3.bf16.msra.mxu0 %v866_v19  ;;  %765 = vmatpush3.bf16.msra.mxu1 %v866_v19 }
  0x2e   :  { %735 = vmatprep.subr.bf16.mxu0 %v870_v20  ;;  %767 = vmatprep.subr.bf16.mxu1 %v870_v20 }
  0x2f   :  { %133 = vmatprep.mubr.f32.mxu0 %v53_v60  ;;  %227 = vmatprep.mubr.f32.mxu1 %v464_v61 }
  0x30   :  { %134 = vmatmul.mubr.f32.gmra.mrb[6].mxu0 %v52_v62  ;;  %228 = vmatmul.mubr.f32.gmra.mrb[6].mxu1 %v463_v63 }
  0x31   :  { %737 = vmatpush3.bf16.msra.mxu0 %v892_v27  ;;  %769 = vmatpush3.bf16.msra.mxu1 %v892_v27 }
  0x32   :  { %739 = vmatprep.subr.bf16.mxu0 %v896_v28  ;;  %771 = vmatprep.subr.bf16.mxu1 %v896_v28 }
  0x33   :  { %310 = vmatprep.mubr.f32.mxu0 %v466_v0  ;;  %408 = vmatprep.mubr.f32.mxu1 %v474_v1 }
  0x35   :  { %741 = vmatpush3.bf16.msra.mxu0 %v912_v33  ;;  %773 = vmatpush3.bf16.msra.mxu1 %v912_v33 }
  0x36   :  { %743 = vmatprep.subr.bf16.mxu0 %v916_v34  ;;  %775 = vmatprep.subr.bf16.mxu1 %v916_v34 }
  0x39   :  { %745 = vmatpush3.bf16.msra.mxu0 %v932_v39  ;;  %777 = vmatpush3.bf16.msra.mxu1 %v932_v39 }
  0x3a   :  { %747 = vmatprep.subr.bf16.mxu0 %v936_v40  ;;  %779 = vmatprep.subr.bf16.mxu1 %v936_v40 }
  0x3d   :  { %749 = vmatpush3.bf16.msra.mxu0 %v952_v45  ;;  %781 = vmatpush3.bf16.msra.mxu1 %v952_v45 }
  0x3e   :  { %751 = vmatprep.subr.bf16.mxu0 %v956_v46  ;;  %783 = vmatprep.subr.bf16.mxu1 %v956_v46 }
  0x41   :  { %753 = vmatpush3.bf16.msra.mxu0 %v966_v49  ;;  %785 = vmatpush3.bf16.msra.mxu1 %v966_v49 }
  0x44   :  { %311 = vmatmul.mubr.f32.vlgmr.msra.gmra.mrb[8].mxu0 %v465_v2  ;;  %409 = vmatmul.mubr.f32.vlgmr.msra.gmra.mrb[8].mxu1 %v473_v3 }
  0x45   :  { %315 = vmatprep.mubr.f32.mxu0 %v468_v4  ;;  %413 = vmatprep.mubr.f32.mxu1 %v476_v5 }
  0x48   :  { %316 = vmatmul.mubr.f32.gmra.mrb[10].mxu0 %v467_v6  ;;  %414 = vmatmul.mubr.f32.gmra.mrb[10].mxu1 %v475_v7 }
  0x49   :  { %320 = vmatprep.mubr.f32.mxu0 %v470_v8  ;;  %418 = vmatprep.mubr.f32.mxu1 %v478_v9 }
  0x4c   :  { %321 = vmatmul.mubr.f32.gmra.mrb[12].mxu0 %v469_v10  ;;  %419 = vmatmul.mubr.f32.gmra.mrb[12].mxu1 %v477_v11 }
  0x4d   :  { %325 = vmatprep.mubr.f32.mxu0 %v472_v12  ;;  %423 = vmatprep.mubr.f32.mxu1 %v480_v13 }
  0x50   :  { %326 = vmatmul.mubr.f32.gmra.mrb[14].mxu0 %v471_v14  ;;  %424 = vmatmul.mubr.f32.gmra.mrb[14].mxu1 %v479_v15 }
  0xf7   :  { %v514_v16 = vpop.f32.mrb[0].mxu0  ;;  %v558_v17 = vpop.f32.mrb[0].mxu1 }
  0xf8   :  { %v515_v18 = vpop.f32.mrb[1].mxu0  ;;  %v559_v19 = vpop.f32.mrb[1].mxu1 }
  0xf9   :  { %v516_v20 = vadd.f32 %v515_v18, %v514_v16  ;;  %v560_v21 = vadd.f32 %v559_v19, %v558_v17 }
  0xfb   :  { %v233_v22 = vmax.f32 %v516_v20, %v560_v21  ;;  %v517_v23 = vpop.f32.mrb[2].mxu0  ;;  %v561_v24 = vpop.f32.mrb[2].mxu1 }
  0xfc   :  { %v518_v25 = vpop.f32.mrb[3].mxu0  ;;  %v562_v26 = vpop.f32.mrb[3].mxu1 }
  0xfd   :  { %v519_v27 = vadd.f32 %v518_v25, %v517_v23  ;;  %v563_v28 = vadd.f32 %v562_v26, %v561_v24 }
  0xff   :  { %v234_v29 = vmax.f32 %v519_v27, %v563_v28  ;;  %v520_v30 = vpop.f32.mrb[4].mxu0  ;;  %v564_v31 = vpop.f32.mrb[4].mxu1 }
 0x100   :  { %v521_v32 = vpop.f32.mrb[5].mxu0  ;;  %v565_v33 = vpop.f32.mrb[5].mxu1 }
 0x101   :  { %v522_v34 = vadd.f32 %v521_v32, %v520_v30  ;;  %v566_v35 = vadd.f32 %v565_v33, %v564_v31 }
 0x103   :  { %v235_v36 = vmax.f32 %v522_v34, %v566_v35  ;;  %v523_v37 = vpop.f32.mrb[6].mxu0  ;;  %v567_v38 = vpop.f32.mrb[6].mxu1 }
 0x104   :  { %v524_v39 = vpop.f32.mrb[7].mxu0  ;;  %v568_v40 = vpop.f32.mrb[7].mxu1 }
 0x105   :  { %v525_v41 = vadd.f32 %v524_v39, %v523_v37  ;;  %v569_v42 = vadd.f32 %v568_v40, %v567_v38 }
 0x107   :  { %v236_v43 = vmax.f32 %v525_v41, %v569_v42 }
 0x117   :  { %v602_v44 = vpop.f32.mrb[8].mxu0  ;;  %v646_v45 = vpop.f32.mrb[8].mxu1 }
 0x118   :  { %v603_v46 = vpop.f32.mrb[9].mxu0  ;;  %v647_v47 = vpop.f32.mrb[9].mxu1 }
 0x119   :  { %v604_v48 = vadd.f32 %v603_v46, %v602_v44  ;;  %v648_v49 = vadd.f32 %v647_v47, %v646_v45 }
 0x11b   :  { %v331_v50 = vmax.f32 %v233_v22, %v604_v48  ;;  %v605_v51 = vpop.f32.mrb[10].mxu0  ;;  %v649_v52 = vpop.f32.mrb[10].mxu1 }
 0x11c   :  { %v606_v54 = vpop.f32.mrb[11].mxu0  ;;  %v650_v55 = vpop.f32.mrb[11].mxu1 }
 0x11d   :  { %v429_v56 = vmax.f32 %v331_v50, %v648_v49  ;;  %v607_v57 = vadd.f32 %v606_v54, %v605_v51  ;;  %v651_v58 = vadd.f32 %v650_v55, %v649_v52 }
 0x11f   :  { %v440_v59 = vadd.f32 %v481_v53, %v429_v56  ;;  %v332_v60 = vmax.f32 %v234_v29, %v607_v57  ;;  %v608_v61 = vpop.f32.mrb[12].mxu0  ;;  %v652_v62 = vpop.f32.mrb[12].mxu1 }
 0x120   :  { %v609_v63 = vpop.f32.mrb[13].mxu0  ;;  %v653_v0 = vpop.f32.mrb[13].mxu1 }
 0x121   :  { %v444_v1 = vmax.f32 %v440_v59, 0.0  ;;  %v430_v2 = vmax.f32 %v332_v60, %v651_v58  ;;  %v610_v3 = vadd.f32 %v609_v63, %v608_v61  ;;  %v654_v4 = vadd.f32 %v653_v0, %v652_v62 }
 0x123   :  { %449 = vst.msk [vmem:[%s1116_s3] sm:$0xff] %vm448_vm0, %v444_v1  ;;  %v441_v5 = vadd.f32 %v481_v53, %v430_v2  ;;  %v333_v6 = vmax.f32 %v235_v36, %v610_v3  ;;  %v611_v7 = vpop.f32.mrb[14].mxu0  ;;  %v655_v8 = vpop.f32.mrb[14].mxu1 }
 0x124   :  { %v612_v9 = vpop.f32.mrb[15].mxu0  ;;  %v656_v10 = vpop.f32.mrb[15].mxu1 }
 0x125   :  { %v445_v11 = vmax.f32 %v441_v5, 0.0  ;;  %v431_v12 = vmax.f32 %v333_v6, %v654_v4  ;;  %v613_v13 = vadd.f32 %v612_v9, %v611_v7  ;;  %v657_v14 = vadd.f32 %v656_v10, %v655_v8 }
 0x127   :  { %450 = vst.msk [vmem:[%s1116_s3 + $0x8] sm:$0xff] %vm448_vm0, %v445_v11  ;;  %v442_v15 = vadd.f32 %v481_v53, %v431_v12  ;;  %v334_v16 = vmax.f32 %v236_v43, %v613_v13 }
 0x129   :  { %v446_v17 = vmax.f32 %v442_v15, 0.0  ;;  %v432_v18 = vmax.f32 %v334_v16, %v657_v14 }
 0x12b   :  { %451 = vst.msk [vmem:[%s1116_s3 + $0x10] sm:$0xff] %vm448_vm0, %v446_v17  ;;  %v443_v19 = vadd.f32 %v481_v53, %v432_v18 }
 0x12d   :  { %v447_v20 = vmax.f32 %v443_v19, 0.0 }
 0x12f   :  { %452 = vst.msk [vmem:[%s1116_s3 + $0x18] sm:$0xff] %vm448_vm0, %v447_v20 }

// kernel: cnn_forward.5
= control target key start
LH: loop header
LB: loop body
LE: loop exit
PB: predicated region body
PF: predicated region fallthrough
CT: control target
= control target key end

     0   :  { %s886_s0 = inlined_call_operand.vmem [shape: f32[32,384], index: 0, kind: input, shape index: {}]   ;;  %s887_s1 = inlined_call_operand.vmem [shape: f32[384,64], index: 1, kind: input, shape index: {}]   ;;  %s888_s2 = inlined_call_operand.vmem [shape: f32[1,64], index: 2, kind: input, shape index: {}]   ;;  %s889_s3 = inlined_call_operand.vmem [shape: f32[64,2], index: 3, kind: input, shape index: {}]   ;;  %s890_s4 = inlined_call_operand.vmem [shape: f32[1,2], index: 4, kind: input, shape index: {}]   ;;  %s891_s5 = inlined_call_operand.hbm [shape: f32[2,2], index: 5, kind: output, shape index: {}]  }
   0x1   :  { %v49_v0 = vld [vmem:[%s887_s1 + $0x80] sm:$0xff]  ;;  %v50_v1 = vld [vmem:[%s887_s1 + $0x88] sm:$0xff]  ;;  %v51_v5 = vld [vmem:[%s887_s1 + $0x90] sm:$0xff] }
   0x2   :  { %v33_v2 = vld [vmem:[%s887_s1] sm:$0xff]  ;;  %v521_v3 = vpack.c.bf16 %v50_v1, %v49_v0  ;;  %v34_v4 = vld [vmem:[%s887_s1 + $0x8] sm:$0xff]  ;;  %v52_v6 = vld [vmem:[%s887_s1 + $0x98] sm:$0xff] }
   0x3   :  { %v523_v7 = vpack.c.bf16 %v34_v4, %v33_v2  ;;  %v525_v8 = vpack.c.bf16 %v52_v6, %v51_v5  ;;  %v65_v9 = vld [vmem:[%s887_s1 + $0x100] sm:$0xff]  ;;  %v66_v10 = vld [vmem:[%s887_s1 + $0x108] sm:$0xff]  ;;  %v35_v11 = vld [vmem:[%s887_s1 + $0x10] sm:$0xff] }
   0x4   :  { %522 = vmatprep.subr.bf16.mxu0 %v521_v3  ;;  %v553_v12 = vpack.c.bf16 %v66_v10, %v65_v9  ;;  %v36_v13 = vld [vmem:[%s887_s1 + $0x18] sm:$0xff]  ;;  %v53_v14 = vld [vmem:[%s887_s1 + $0xa0] sm:$0xff]  ;;  %v54_v15 = vld [vmem:[%s887_s1 + $0xa8] sm:$0xff] }
   0x5   :  { %524 = vmatpush3.bf16.msra.mxu0 %v523_v7  ;;  %v527_v16 = vpack.c.bf16 %v36_v13, %v35_v11  ;;  %v67_v17 = vld [vmem:[%s887_s1 + $0x110] sm:$0xff]  ;;  %v68_v18 = vld [vmem:[%s887_s1 + $0x118] sm:$0xff]  ;;  %v529_v19 = vpack.c.bf16 %v54_v15, %v53_v14  ;;  %v37_v21 = vld [vmem:[%s887_s1 + $0x20] sm:$0xff] }
   0x6   :  { %526 = vmatprep.subr.bf16.mxu0 %v525_v8  ;;  %554 = vmatprep.subr.bf16.mxu1 %v553_v12  ;;  %v557_v20 = vpack.c.bf16 %v68_v18, %v67_v17  ;;  %v38_v22 = vld [vmem:[%s887_s1 + $0x28] sm:$0xff]  ;;  %v55_v23 = vld [vmem:[%s887_s1 + $0xb0] sm:$0xff]  ;;  %v56_v24 = vld [vmem:[%s887_s1 + $0xb8] sm:$0xff] }
   0x7   :  { %556 = vmatpush3.bf16.msra.mxu1 %v553_v12  ;;  %v69_v25 = vld [vmem:[%s887_s1 + $0x120] sm:$0xff]  ;;  %v70_v26 = vld [vmem:[%s887_s1 + $0x128] sm:$0xff]  ;;  %v531_v28 = vpack.c.bf16 %v38_v22, %v37_v21  ;;  %v71_v29 = vld [vmem:[%s887_s1 + $0x130] sm:$0xff]  ;;  %v533_v31 = vpack.c.bf16 %v56_v24, %v55_v23 }
   0x8   :  { %558 = vmatprep.subr.bf16.mxu1 %v557_v20  ;;  %v561_v27 = vpack.c.bf16 %v70_v26, %v69_v25  ;;  %v72_v30 = vld [vmem:[%s887_s1 + $0x138] sm:$0xff]  ;;  %v39_v32 = vld [vmem:[%s887_s1 + $0x30] sm:$0xff]  ;;  %v57_v34 = vld [vmem:[%s887_s1 + $0xc0] sm:$0xff] }
   0x9   :  { %528 = vmatpush3.bf16.msra.mxu0 %v527_v16  ;;  %v40_v33 = vld [vmem:[%s887_s1 + $0x38] sm:$0xff]  ;;  %v58_v35 = vld [vmem:[%s887_s1 + $0xc8] sm:$0xff]  ;;  %v565_v36 = vpack.c.bf16 %v72_v30, %v71_v29  ;;  %v73_v38 = vld [vmem:[%s887_s1 + $0x140] sm:$0xff] }
   0xa   :  { %530 = vmatprep.subr.bf16.mxu0 %v529_v19  ;;  %v535_v37 = vpack.c.bf16 %v40_v33, %v39_v32  ;;  %v74_v39 = vld [vmem:[%s887_s1 + $0x148] sm:$0xff]  ;;  %v537_v40 = vpack.c.bf16 %v58_v35, %v57_v34  ;;  %v41_v41 = vld [vmem:[%s887_s1 + $0x40] sm:$0xff]  ;;  %v59_v43 = vld [vmem:[%s887_s1 + $0xd0] sm:$0xff] }
   0xb   :  { %560 = vmatpush3.bf16.msra.mxu1 %v557_v20  ;;  %v42_v42 = vld [vmem:[%s887_s1 + $0x48] sm:$0xff]  ;;  %v60_v44 = vld [vmem:[%s887_s1 + $0xd8] sm:$0xff]  ;;  %v569_v45 = vpack.c.bf16 %v74_v39, %v73_v38  ;;  %v75_v48 = vld [vmem:[%s887_s1 + $0x150] sm:$0xff] }
   0xc   :  { %562 = vmatprep.subr.bf16.mxu1 %v561_v27  ;;  %v22_v46 = vld [vmem:[%s886_s0 + $0x8] sm:$0xff]  ;;  %v539_v47 = vpack.c.bf16 %v42_v42, %v41_v41  ;;  %v76_v49 = vld [vmem:[%s887_s1 + $0x158] sm:$0xff]  ;;  %v541_v50 = vpack.c.bf16 %v60_v44, %v59_v43  ;;  %v43_v51 = vld [vmem:[%s887_s1 + $0x50] sm:$0xff] }
   0xd   :  { %532 = vmatpush3.bf16.msra.mxu0 %v531_v28  ;;  %152 = vmatprep.mubr.f32.mxu0 %v22_v46  ;;  %v44_v52 = vld [vmem:[%s887_s1 + $0x58] sm:$0xff]  ;;  %v23_v53 = vld [vmem:[%s886_s0 + $0x10] sm:$0xff]  ;;  %v61_v54 = vld [vmem:[%s887_s1 + $0xe0] sm:$0xff]  ;;  %v573_v56 = vpack.c.bf16 %v76_v49, %v75_v48 }
   0xe   :  { %534 = vmatprep.subr.bf16.mxu0 %v533_v31  ;;  %v62_v55 = vld [vmem:[%s887_s1 + $0xe8] sm:$0xff]  ;;  %496 = vmatprep.mubr.f32.mxu1 %v23_v53  ;;  %v543_v57 = vpack.c.bf16 %v44_v52, %v43_v51  ;;  %v77_v58 = vld [vmem:[%s887_s1 + $0x160] sm:$0xff] }
   0xf   :  { %564 = vmatpush3.bf16.msra.mxu1 %v561_v27  ;;  %v78_v59 = vld [vmem:[%s887_s1 + $0x168] sm:$0xff] }
  0x10   :  { %566 = vmatprep.subr.bf16.mxu1 %v565_v36 }
  0x11   :  { %536 = vmatpush3.bf16.msra.mxu0 %v535_v37 }
  0x12   :  { %538 = vmatprep.subr.bf16.mxu0 %v537_v40 }
  0x13   :  { %568 = vmatpush3.bf16.msra.mxu1 %v565_v36 }
  0x14   :  { %570 = vmatprep.subr.bf16.mxu1 %v569_v45 }
  0x15   :  { %540 = vmatpush3.bf16.msra.mxu0 %v539_v47 }
  0x16   :  { %10 = vsyncpa [#allocation3], 0  ;;  %542 = vmatprep.subr.bf16.mxu0 %v541_v50  ;;  %v545_v60 = vpack.c.bf16 %v62_v55, %v61_v54  ;;  %v45_v61 = vld [vmem:[%s887_s1 + $0x60] sm:$0xff]  ;;  %v46_v62 = vld [vmem:[%s887_s1 + $0x68] sm:$0xff]  ;;  %v577_v1 = vpack.c.bf16 %v78_v59, %v77_v58  ;;  %v625_v23 = vmov 0.0|0.0   ;;  %vm626_vm0 = vmmov 0  }
  0x17   :  { %572 = vmatpush3.bf16.msra.mxu1 %v569_v45  ;;  %v63_v63 = vld [vmem:[%s887_s1 + $0xf0] sm:$0xff]  ;;  %v64_v0 = vld [vmem:[%s887_s1 + $0xf8] sm:$0xff]  ;;  %v547_v2 = vpack.c.bf16 %v46_v62, %v45_v61  ;;  %v21_v10 = vld [vmem:[%s886_s0] sm:$0xff]  ;;  %v627_v33 = vmov 0.0   ;;  %vm262_vm1 = vcmask 523264   ;;  %vm298_vm2 = vcmask 1041409  }
  0x18   :  { %574 = vmatprep.subr.bf16.mxu1 %v573_v56  ;;  %v79_v3 = vld [vmem:[%s887_s1 + $0x170] sm:$0xff]  ;;  %v80_v4 = vld [vmem:[%s887_s1 + $0x178] sm:$0xff]  ;;  %v549_v5 = vpack.c.bf16 %v64_v0, %v63_v63  ;;  %v25_v11 = vld [vmem:[%s886_s0 + $0x20] sm:$0xff]  ;;  %s628_s28 = smov [#allocation2]   ;;  %vm372_vm3 = vcmask 9216  }
  0x19   :  { %544 = vmatpush3.bf16.msra.mxu0 %v543_v57  ;;  %v47_v6 = vld [vmem:[%s887_s1 + $0x70] sm:$0xff]  ;;  %v48_v7 = vld [vmem:[%s887_s1 + $0x78] sm:$0xff]  ;;  %v581_v8 = vpack.c.bf16 %v80_v4, %v79_v3  ;;  %v26_v12 = vld [vmem:[%s886_s0 + $0x28] sm:$0xff]  ;;  %s380_s29 = sshll.u32 %s628_s28, 4  ;;  %s381_s29 = int_to_ptr.vmem [resolvable:$true] %s380_s29 }
  0x1a   :  { %546 = vmatprep.subr.bf16.mxu0 %v545_v60  ;;  %v551_v9 = vpack.c.bf16 %v48_v7, %v47_v6  ;;  %v29_v13 = vld [vmem:[%s886_s0 + $0x40] sm:$0xff]  ;;  %v24_v14 = vld [vmem:[%s886_s0 + $0x18] sm:$0xff]  ;;  %v27_v17 = vld [vmem:[%s886_s0 + $0x30] sm:$0xff]  ;;  %s601_s30 = scalar_lea.vmem %s381_s29, 32  ;;  %p606_p1 = scmp.lt.s32.totalorder %s381_s29, %s381_s29 }
  0x1b   :  { %576 = vmatpush3.bf16.msra.mxu1 %v573_v56  ;;  %v28_v15 = vld [vmem:[%s886_s0 + $0x38] sm:$0xff]  ;;  %v31_v18 = vld [vmem:[%s886_s0 + $0x50] sm:$0xff]  ;;  %v30_v19 = vld [vmem:[%s886_s0 + $0x48] sm:$0xff]  ;;  %p602_p0 = scmp.ne.s32.totalorder %s381_s29, %s601_s30  ;;  %p607_p2 = scmp.lt.s32.totalorder %s601_s30, %s601_s30 }
  0x1c   :  { %578 = vmatprep.subr.bf16.mxu1 %v577_v1  ;;  %v32_v16 = vld [vmem:[%s886_s0 + $0x58] sm:$0xff]  ;;  %v281_v20 = vld [vmem:[%s889_s3] sm:$0xff]  ;;  %v282_v21 = vld [vmem:[%s889_s3 + $0x8] sm:$0xff] }
  0x1d   :  { %548 = vmatpush3.bf16.msra.mxu0 %v547_v2  ;;  %v586_v22 = vpack.c.bf16 %v282_v21, %v281_v20  ;;  %v283_v24 = vld [vmem:[%s889_s3 + $0x10] sm:$0xff]  ;;  %v284_v25 = vld [vmem:[%s889_s3 + $0x18] sm:$0xff]  ;;  %v285_v27 = vld [vmem:[%s889_s3 + $0x20] sm:$0xff]  ;;  %p608_p3 = por %p607_p2, %p606_p1 }
  0x1e   :  { %550 = vmatprep.subr.bf16.mxu0 %v549_v5  ;;  %v589_v26 = vpack.c.bf16 %v284_v25, %v283_v24  ;;  %v286_v28 = vld [vmem:[%s889_s3 + $0x28] sm:$0xff]  ;;  %v287_v30 = vld [vmem:[%s889_s3 + $0x30] sm:$0xff]  ;;  %v288_v31 = vld [vmem:[%s889_s3 + $0x38] sm:$0xff] }
  0x1f   :  { %580 = vmatpush3.bf16.msra.mxu1 %v577_v1  ;;  %v592_v29 = vpack.c.bf16 %v286_v28, %v285_v27  ;;  %v595_v32 = vpack.c.bf16 %v288_v31, %v287_v30  ;;  %v388_v36 = vld [vmem:[%s888_s2] ss:$0 sm:$0xff]  ;;  %p609_p4 = pnand %p608_p3, %p602_p0 }
  0x20   :  { %582 = vmatprep.subr.bf16.mxu1 %v581_v8 }
  0x21   :  { %552 = vmatpush3.bf16.msra.mxu0 %v551_v9 }
  0x22   :  { %585 = vmatprep.subr.bf16.mxu0 %v625_v23 }
  0x23   :  { %584 = vmatpush3.bf16.msra.mxu1 %v581_v8 }
  0x24   :  { %153 = vmatmul.mubr.f32.vlgmr.msra.gmra.mrb[0].mxu0 %v21_v10 }
  0x25   :  { %157 = vmatprep.mubr.f32.mxu0 %v25_v11  ;;  %587 = vmatpush3.bf16.msra.mxu0 %v586_v22 }
  0x26   :  { %497 = vmatmul.mubr.f32.vlgmr.msra.gmra.mrb[0].mxu1 %v26_v12  ;;  %588 = vmatprep.subr.bf16.mxu0 %v625_v23 }
  0x27   :  { %499 = vmatprep.mubr.f32.mxu1 %v29_v13 }
  0x28   :  { %158 = vmatmul.mubr.f32.gmra.mrb[2].mxu0 %v24_v14 }
  0x29   :  { %162 = vmatprep.mubr.f32.mxu0 %v28_v15  ;;  %590 = vmatpush3.bf16.msra.mxu0 %v589_v26 }
  0x2a   :  { %500 = vmatmul.mubr.f32.gmra.mrb[2].mxu1 %v32_v16  ;;  %591 = vmatprep.subr.bf16.mxu0 %v625_v23 }
  0x2c   :  { %163 = vmatmul.mubr.f32.gmra.mrb[4].mxu0 %v27_v17 }
  0x2d   :  { %167 = vmatprep.mubr.f32.mxu0 %v31_v18  ;;  %593 = vmatpush3.bf16.msra.mxu0 %v592_v29  ;;  %v389_v18 = vld [vmem:[%s890_s4] ss:$0 sm:$0xff] }
  0x2e   :  { %594 = vmatprep.subr.bf16.mxu0 %v625_v23 }
  0x30   :  { %168 = vmatmul.mubr.f32.gmra.mrb[6].mxu0 %v30_v19 }
  0x31   :  { %596 = vmatpush3.bf16.msra.mxu0 %v595_v32  ;;  %518 = vmatprep.mubr.msk.f32.mxu0 %vm626_vm0, %v627_v33 }
  0xf7   :  { %v423_v34 = vpop.f32.mrb[0].mxu0 }
  0xf8   :  { %v424_v35 = vpop.f32.mrb[1].mxu0 }
  0xf9   :  { %v425_v37 = vadd.f32 %v424_v35, %v423_v34  ;;  %v498_v38 = vpop.f32.mrb[0].mxu1 }
  0xfa   :  { %v239_v39 = vpop.f32.mrb[1].mxu1 }
  0xfb   :  { %v426_v40 = vpop.f32.mrb[2].mxu0  ;;  %v155_v41 = vadd.f32 %v425_v37, %v388_v36 }
  0xfc   :  { %v427_v42 = vpop.f32.mrb[3].mxu0 }
  0xfd   :  { %v428_v43 = vadd.f32 %v427_v42, %v426_v40  ;;  %v240_v44 = vadd.f32 %v239_v39, %v155_v41  ;;  %v501_v45 = vpop.f32.mrb[2].mxu1 }
  0xfe   :  { %v249_v46 = vpop.f32.mrb[3].mxu1 }
  0xff   :  { %v160_v47 = vadd.f32 %v428_v43, %v388_v36  ;;  %v429_v48 = vpop.f32.mrb[4].mxu0  ;;  %v258_v51 = vmax.f32 %v240_v44, 0.0 }
 0x100   :  { %v430_v49 = vpop.f32.mrb[5].mxu0 }
 0x101   :  { %v245_v50 = vadd.f32 %v498_v38, %v160_v47  ;;  %v431_v52 = vadd.f32 %v430_v49, %v429_v48  ;;  %v263_v57 = vsel %vm262_vm1, %v258_v51, 0.0 }
 0x103   :  { %v259_v53 = vmax.f32 %v245_v50, 0.0  ;;  %v432_v54 = vpop.f32.mrb[6].mxu0  ;;  %v165_v55 = vadd.f32 %v431_v52, %v388_v36 }
 0x104   :  { %v433_v56 = vpop.f32.mrb[7].mxu0 }
 0x105   :  { %v264_v58 = vsel %vm262_vm1, %v259_v53, 0.0  ;;  %v434_v59 = vadd.f32 %v433_v56, %v432_v54  ;;  %v250_v60 = vadd.f32 %v249_v46, %v165_v55 }
 0x106   :  { %v265_v61 = vadd.f32 %v264_v58, %v263_v57 }
 0x107   :  { %v170_v62 = vadd.f32 %v434_v59, %v388_v36  ;;  %v260_v1 = vmax.f32 %v250_v60, 0.0 }
 0x108   :  { %v266_v63 = vrot.slane %v265_v61, 4 }
 0x109   :  { %v255_v0 = vadd.f32 %v501_v45, %v170_v62  ;;  %v272_v4 = vsel %vm262_vm1, %v260_v1, 0.0 }
 0x10a   :  { %v267_v2 = vadd.f32 %v266_v63, %v265_v61 }
 0x10b   :  { %v261_v3 = vmax.f32 %v255_v0, 0.0 }
 0x10c   :  { %v268_v6 = vrot.slane %v267_v2, 2 }
 0x10d   :  { %v273_v5 = vsel %vm262_vm1, %v261_v3, 0.0 }
 0x10e   :  { %v274_v7 = vadd.f32 %v273_v5, %v272_v4  ;;  %v269_v9 = vadd.f32 %v268_v6, %v267_v2 }
 0x110   :  { %v275_v8 = vrot.slane %v274_v7, 4  ;;  %v270_v12 = vrot.slane %v269_v9, 1 }
 0x112   :  { %v276_v10 = vadd.f32 %v275_v8, %v274_v7  ;;  %v271_v15 = vadd.f32 %v270_v12, %v269_v9 }
 0x114   :  { %v277_v11 = vrot.slane %v276_v10, 2 }
 0x116   :  { %v278_v13 = vadd.f32 %v277_v11, %v276_v10 }
 0x118   :  { %v279_v14 = vrot.slane %v278_v13, 1 }
 0x11a   :  { %v280_v16 = vadd.f32 %v279_v14, %v278_v13 }
 0x11c   :  { %v299_v17 = vsel %vm298_vm2, %v280_v16, %v271_v15 }
 0x11d   :  { %519 = vmatmul.mubr.msk.f32.vlgmr.msra.gmra.mrb[8].mxu0 %vm262_vm1, %v299_v17 }
 0x1f0   :  { %v368_v19 = vpop.f32.mrb[8].mxu0 }
 0x1f1   :  { %v369_v20 = vadd.f32 %v389_v18, %v368_v19  ;;  %v520_v21 = vpop.f32.mrb[9].mxu0 }
 0x1f3   :  { %373 = vst.msk [vmem:[#allocation2] sm:$0x3] %vm372_vm3, %v369_v20 }
 0x1f4   :  { %612 = shalt.err (!%p609_p4)
}
 0x1f5   :  { %s613_s8 = scalar_lea.hbm %s891_s5, 32 }
 0x1f6   :  { %p614_p5 = scmp.ne.s32.totalorder %s891_s5, %s613_s8  ;;  %p617_p6 = scmp.lt.u32.totalorder %s613_s8, %s891_s5 }
 0x1f8   :  { %p619_p7 = pnand %p617_p6, %p614_p5 }
 0x1fa   :  { %622 = shalt.err (!%p619_p7)
}
 0x1fb   :  { %383 = dma.vmem_to_hbm [thread:$0]  %s381_s29, 32, %s891_s5, [#allocation3]  }
 0x1fc   :  { %623 = dma.done.wait [#allocation3], 32  }
 0x1fd   :  { %624 = vsyncadd [#allocation3], 4294967264 }
 0x1fe   :  { %387 = vsyncpa [#allocation3], 1 }

</bundles_post_ra>
